<compile_context>
chip_gen: v7x
topology: tpu7x:2x2x1
jax: 0.10.0
libtpu: 0.0.40
codegen_flags: <defaults>
</compile_context>

<pallas_src>
import functools

import numpy as np

import jax
import jax.numpy as jnp
from jax.experimental import pallas as pl
from jax.experimental.pallas import tpu as pltpu


def _head_kernel(x_ref, w1t_ref, kmt_ref, gnp_ref, w2m_ref, msk_ref, b2_ref,
                 mask_ref, cls_ref, *, H, W):
    """Fused upsample + conv1 + GroupNorm + ReLU + conv2 + sigmoid + max.

    x_ref   : (1, Cin, F)        raw decoder features, F = hf*wf (bf16)
    w1t_ref : (9*Cmid, Cin)      conv1 weights, tap-major rows (bf16)
    kmt_ref : (9, F, HW)         transposed tap-shifted bilinear matrices
                                 (all-zero cols implement 'same' padding, bf16)
    gnp_ref : (Cmid, 2)          GroupNorm [gamma | beta] columns (f32)
    w2m_ref : (9, Cmid)          conv2 weights, tap-major (f32)
    msk_ref : (9, HW)            conv2 border masks per tap (f32)
    b2_ref  : (1,) in SMEM       conv2 bias
    mask_ref: (1, 1, HW)         sigmoid(conv2(...)) output (lane dense)
    cls_ref : (1, 1, 1)          global max of mask
    """
    HW = H * W
    Cmid = gnp_ref.shape[0]

    # ---- conv1 channel contraction for all 9 taps in ONE MXU matmul -------
    xT = x_ref[0]                                             # (Cin, F) bf16
    zT = jnp.dot(w1t_ref[...], xT,
                 preferred_element_type=jnp.float32)          # (9*Cmid, F)
    zT = zT.astype(jnp.bfloat16)

    # ---- bilinear upsample + zero pad folded into per-tap interp matmuls --
    # accT[c, p] = sum_k sum_f zT[k*Cmid+c, f] * kmatT[k][f, p]
    accT = jnp.dot(zT[0:Cmid, :], kmt_ref[0],
                   preferred_element_type=jnp.float32)        # (Cmid, HW)
    for k in range(1, 9):
        accT = accT + jnp.dot(zT[k * Cmid:(k + 1) * Cmid, :], kmt_ref[k],
                              preferred_element_type=jnp.float32)
    # NOTE: conv1 bias omitted on purpose -- GroupNorm's per-channel mean
    # subtraction cancels it exactly.

    # ---- GroupNorm(32, 32): per-channel spatial norm (lane-dense layout) --
    mu = jnp.mean(accT, axis=1, keepdims=True)                # (Cmid, 1)
    var = jnp.mean(jnp.square(accT - mu), axis=1, keepdims=True)
    y = (accT - mu) * jax.lax.rsqrt(var + 1e-5)
    y = jnp.maximum(y * gnp_ref[:, 0:1] + gnp_ref[:, 1:2], 0.0)   # (Cmid, HW)

    # ---- conv2 (3x3, Cmid -> 1): channel reduction on the MXU -------------
    taps = jnp.dot(w2m_ref[...], y,
                   preferred_element_type=jnp.float32)        # (9, HW)

    # 3x3 spatial accumulation: rolled (shifted) tap planes * border masks.
    msk = msk_ref[...]                                        # (9, HW)
    o = None
    for k in range(9):
        ky, kx = k // 3, k % 3
        d = (ky - 1) * W + (kx - 1)                           # flat tap offset
        rolled = pltpu.roll(taps[k:k + 1, :], shift=(-d) % HW, axis=1)
        term = rolled * msk[k:k + 1, :]
        o = term if o is None else o + term                   # (1, HW)

    z = jax.nn.sigmoid(o + b2_ref[0])                         # (1, HW)

    mask_ref[0] = z
    # AdaptiveMaxPool2d((1, 1)): global max over the spatial positions.
    cls_ref[0] = jnp.max(z, axis=1, keepdims=True)


def _bilinear_matrix(size_out, size_in):
    """(size_out, size_in) matrix reproducing PyTorch F.interpolate
    mode='bilinear', align_corners=False along one axis."""
    scale = size_in / size_out
    src = (np.arange(size_out, dtype=np.float32) + 0.5) * scale - 0.5
    src = np.clip(src, 0.0, float(size_in - 1))
    i0 = np.clip(np.floor(src).astype(np.int32), 0, size_in - 1)
    i1 = np.minimum(i0 + 1, size_in - 1)
    lam = (src - i0).astype(np.float32)
    u = np.zeros((size_out, size_in), np.float32)
    u[np.arange(size_out), i0] += 1.0 - lam
    u[np.arange(size_out), i1] += lam
    return u


@functools.partial(jax.jit, static_argnames=("out_hw",))
def resnet_head(features, out_hw, params):
    """features: (N, 448, hf, wf) decoder feature map, NCHW float32.

    Returns {'mask': (N, 1, H, W), 'class': (N, 1)}.
    """
    N, Cin, hf, wf = features.shape
    H, W = out_hw
    Cmid = params["w1"].shape[0]                              # 32
    HW, F = H * W, hf * wf

    # --- host-side (numpy) constants: baked, no gather/pad HLOs ------------
    uh = _bilinear_matrix(H, hf)
    uw = _bilinear_matrix(W, wf)
    kfull = np.einsum("ha,wb->hwab", uh, uw).reshape(H, W, F)
    kpad = np.zeros((H + 2, W + 2, F), np.float32)
    kpad[1:H + 1, 1:W + 1] = kfull
    # transposed tap-shifted interpolation matrices: (9, F, HW)
    kmatT = np.stack([kpad[ky:ky + H, kx:kx + W].reshape(HW, F).T
                      for ky in range(3) for kx in range(3)])
    # conv2 border-validity masks per tap: (9, HW)
    ii, jj = np.meshgrid(np.arange(H), np.arange(W), indexing="ij")
    mask9 = np.stack([
        (((ii + ky - 1 >= 0) & (ii + ky - 1 < H) &
          (jj + kx - 1 >= 0) & (jj + kx - 1 < W))
         .astype(np.float32)).reshape(HW)
        for ky in range(3) for kx in range(3)])

    # x stays NCHW; merging (hf, wf)->F is a free row-major bitcast.
    x = features.reshape(N, Cin, F).astype(jnp.bfloat16)

    # torch conv1 weight (Cmid, Cin, 3, 3) -> tap-major rows (9*Cmid, Cin)
    w1catT = jnp.transpose(params["w1"], (2, 3, 0, 1)).reshape(
        9 * Cmid, Cin).astype(jnp.bfloat16)
    # torch conv2 weight (1, Cmid, 3, 3) -> (9, Cmid)
    w2m = jnp.transpose(params["w2"][0], (1, 2, 0)).reshape(
        9, Cmid).astype(jnp.float32)
    # pack GroupNorm gamma/beta into one (Cmid, 2) operand
    gnp = jnp.stack([params["gn_gamma"], params["gn_beta"]],
                    axis=1).astype(jnp.float32)
    b2 = params["b2"].reshape(1).astype(jnp.float32)

    kernel = functools.partial(_head_kernel, H=H, W=W)
    mask, cls = pl.pallas_call(
        kernel,
        out_shape=(
            jax.ShapeDtypeStruct((N, 1, HW), jnp.float32),
            jax.ShapeDtypeStruct((N, 1, 1), jnp.float32),
        ),
        grid_spec=pltpu.PrefetchScalarGridSpec(
            num_scalar_prefetch=0,
            grid=(N,),
            in_specs=[
                pl.BlockSpec((1, Cin, F), lambda n: (n, 0, 0)),
                pl.BlockSpec((9 * Cmid, Cin), lambda n: (0, 0)),
                pl.BlockSpec((9, F, HW), lambda n: (0, 0, 0)),
                pl.BlockSpec((Cmid, 2), lambda n: (0, 0)),
                pl.BlockSpec((9, Cmid), lambda n: (0, 0)),
                pl.BlockSpec((9, HW), lambda n: (0, 0)),
                pl.BlockSpec(memory_space=pltpu.SMEM),
            ],
            out_specs=[
                pl.BlockSpec((1, 1, HW), lambda n: (n, 0, 0)),
                pl.BlockSpec((1, 1, 1), lambda n: (n, 0, 0)),
            ],
        ),
        compiler_params=pltpu.CompilerParams(
            dimension_semantics=("parallel",)),
    )(x, w1catT, jnp.asarray(kmatT, dtype=jnp.bfloat16), gnp, w2m,
      jnp.asarray(mask9), b2)

    return {"mask": mask.reshape(N, 1, H, W), "class": cls.reshape(N, 1)}


def _reference_head(features, out_hw, params):
    """Pure-JAX reference (gather-lerp interpolation + lax.conv)."""
    N, Cin, hf, wf = features.shape
    H, W = out_hw

    def axis_idx(size_out, size_in):
        src = (jnp.arange(size_out, dtype=jnp.float32) + 0.5) * (
            size_in / size_out) - 0.5
        src = jnp.clip(src, 0.0, size_in - 1)
        i0 = jnp.clip(jnp.floor(src).astype(jnp.int32), 0, size_in - 1)
        i1 = jnp.minimum(i0 + 1, size_in - 1)
        lam = src - i0.astype(jnp.float32)
        return i0, i1, lam

    ih0, ih1, lh = axis_idx(H, hf)
    iw0, iw1, lw = axis_idx(W, wf)
    lh_ = lh[None, None, :, None]
    xh = features[:, :, ih0, :] * (1.0 - lh_) + features[:, :, ih1, :] * lh_
    xu = xh[:, :, :, iw0] * (1.0 - lw) + xh[:, :, :, iw1] * lw    # (N,C,H,W)
    xu = jnp.transpose(xu, (0, 2, 3, 1))                          # NHWC

    w1 = jnp.transpose(params["w1"], (2, 3, 1, 0))                # HWIO
    dn1 = jax.lax.conv_dimension_numbers(xu.shape, w1.shape,
                                         ("NHWC", "HWIO", "NHWC"))
    y = jax.lax.conv_general_dilated(xu, w1, (1, 1), "SAME",
                                     dimension_numbers=dn1) + params["b1"]
    mu = jnp.mean(y, axis=(1, 2), keepdims=True)
    var = jnp.mean(jnp.square(y - mu), axis=(1, 2), keepdims=True)
    y = (y - mu) * jax.lax.rsqrt(var + 1e-5)
    y = jnp.maximum(y * params["gn_gamma"] + params["gn_beta"], 0.0)

    w2 = jnp.transpose(params["w2"], (2, 3, 1, 0))
    dn2 = jax.lax.conv_dimension_numbers(y.shape, w2.shape,
                                         ("NHWC", "HWIO", "NHWC"))
    z = jax.lax.conv_general_dilated(y, w2, (1, 1), "SAME",
                                     dimension_numbers=dn2) + params["b2"]
    z = jax.nn.sigmoid(z)                                         # (N,H,W,1)
    mask = jnp.transpose(z, (0, 3, 1, 2))                         # (N,1,H,W)
    cls = jnp.max(mask, axis=(1, 2, 3)).reshape(N, 1)
    return {"mask": mask, "class": cls}


def _init_params(key):
    ks = jax.random.split(key, 6)
    return {
        "w1": 0.02 * jax.random.normal(ks[0], (32, 448, 3, 3), jnp.float32),
        "b1": 0.01 * jax.random.normal(ks[1], (32,), jnp.float32),
        "w2": 0.05 * jax.random.normal(ks[2], (1, 32, 3, 3), jnp.float32),
        "b2": 0.01 * jax.random.normal(ks[3], (1,), jnp.float32),
        "gn_gamma": 1.0 + 0.1 * jax.random.normal(ks[4], (32,), jnp.float32),
        "gn_beta": 0.1 * jax.random.normal(ks[5], (32,), jnp.float32),
    }


if __name__ == "__main__":
    key = jax.random.PRNGKey(0)
    k_feat, k_par = jax.random.split(key)

    # Decoder feature map: 448 channels (required by out_conv1), small spatial.
    N, Cin, hf, wf = 2, 448, 8, 8
    H, W = 16, 16                     # target (input image) spatial size
    features = jax.random.normal(k_feat, (N, Cin, hf, wf), jnp.float32)
    params = _init_params(k_par)

    out = resnet_head(features, (H, W), params)
    jax.block_until_ready(out)

    ref = _reference_head(features, (H, W), params)
    assert out["mask"].shape == (N, 1, H, W)
    assert out["class"].shape == (N, 1)
    # bf16 MXU operands (f32 accumulation) -> tolerance relaxed vs f32 path.
    assert jnp.allclose(out["mask"], ref["mask"], atol=1e-2, rtol=1e-2)
    assert jnp.allclose(out["class"], ref["class"], atol=1e-2, rtol=1e-2)

    print("KERNEL_OK")
</pallas_src>

<mosaic_0001>
module attributes {stable_mosaic.version = 11 : i64} {
  func.func @_head_kernel(%arg0: i32, %arg1: memref<1x448x64xbf16, #tpu.memory_space<vmem>>, %arg2: memref<288x448xbf16, #tpu.memory_space<vmem>>, %arg3: memref<9x64x256xbf16, #tpu.memory_space<vmem>>, %arg4: memref<32x2xf32, #tpu.memory_space<vmem>>, %arg5: memref<9x32xf32, #tpu.memory_space<vmem>>, %arg6: memref<9x256xf32, #tpu.memory_space<vmem>>, %arg7: memref<1xf32, #tpu.memory_space<smem>>, %arg8: memref<1x1x256xf32, #tpu.memory_space<vmem>>, %arg9: memref<1x1x1xf32, #tpu.memory_space<vmem>>) attributes {dimension_semantics = [#tpu.dimension_semantics<parallel>], iteration_bounds = array<i64: 2>, scalar_prefetch = 0 : i64, scratch_operands = 0 : i64, tpu.core_type = #tpu.core_type<tc>, window_params = [{transform_indices = @transform_0, window_bounds = array<i64: 1, 448, 64>}, {pipeline_mode = #tpu.pipeline_mode<synchronous>, transform_indices = @transform_1, window_bounds = array<i64: 288, 448>}, {pipeline_mode = #tpu.pipeline_mode<synchronous>, transform_indices = @transform_2, window_bounds = array<i64: 9, 64, 256>}, {pipeline_mode = #tpu.pipeline_mode<synchronous>, transform_indices = @transform_3, window_bounds = array<i64: 32, 2>}, {pipeline_mode = #tpu.pipeline_mode<synchronous>, transform_indices = @transform_4, window_bounds = array<i64: 9, 32>}, {pipeline_mode = #tpu.pipeline_mode<synchronous>, transform_indices = @transform_5, window_bounds = array<i64: 9, 256>}, {transform_indices = @transform_6, window_bounds = array<i64: 1>}, {transform_indices = @transform_7, window_bounds = array<i64: 1, 1, 256>}, {transform_indices = @transform_8, window_bounds = array<i64: 1, 1, 1>}]} {
    %c0 = arith.constant 0 : index
    %c0_0 = arith.constant 0 : index
    %c0_1 = arith.constant 0 : index
    %0 = vector.load %arg1[%c0, %c0_0, %c0_1] : memref<1x448x64xbf16, #tpu.memory_space<vmem>>, vector<1x448x64xbf16>
    %1 = vector.shape_cast %0 : vector<1x448x64xbf16> to vector<448x64xbf16>
    %c0_2 = arith.constant 0 : index
    %c0_3 = arith.constant 0 : index
    %2 = vector.load %arg2[%c0_2, %c0_3] : memref<288x448xbf16, #tpu.memory_space<vmem>>, vector<288x448xbf16>
    %cst = arith.constant dense<0.000000e+00> : vector<288x64xf32>
    %3 = tpu.matmul %2, %1, %cst {dimension_numbers = #tpu.dot_dimension_numbers<[1], [0], [0], [1], [0, 0, 1, 1], [], []>} : vector<288x448xbf16>, vector<448x64xbf16>, vector<288x64xf32> -> vector<288x64xf32>
    %4 = arith.truncf %3 : vector<288x64xf32> to vector<288x64xbf16>
    %5 = vector.extract_strided_slice %4 {offsets = [0, 0], sizes = [32, 64], strides = [1, 1]} : vector<288x64xbf16> to vector<32x64xbf16>
    %c0_4 = arith.constant 0 : index
    %c0_5 = arith.constant 0 : index
    %c0_6 = arith.constant 0 : index
    %6 = vector.load %arg3[%c0_4, %c0_5, %c0_6] : memref<9x64x256xbf16, #tpu.memory_space<vmem>>, vector<1x64x256xbf16>
    %7 = vector.shape_cast %6 : vector<1x64x256xbf16> to vector<64x256xbf16>
    %cst_7 = arith.constant dense<0.000000e+00> : vector<32x256xf32>
    %8 = tpu.matmul %5, %7, %cst_7 {dimension_numbers = #tpu.dot_dimension_numbers<[1], [0], [0], [1], [0, 0, 1, 1], [], []>} : vector<32x64xbf16>, vector<64x256xbf16>, vector<32x256xf32> -> vector<32x256xf32>
    %9 = vector.extract_strided_slice %4 {offsets = [32, 0], sizes = [32, 64], strides = [1, 1]} : vector<288x64xbf16> to vector<32x64xbf16>
    %c1 = arith.constant 1 : index
    %c0_8 = arith.constant 0 : index
    %c0_9 = arith.constant 0 : index
    %10 = vector.load %arg3[%c1, %c0_8, %c0_9] : memref<9x64x256xbf16, #tpu.memory_space<vmem>>, vector<1x64x256xbf16>
    %11 = vector.shape_cast %10 : vector<1x64x256xbf16> to vector<64x256xbf16>
    %cst_10 = arith.constant dense<0.000000e+00> : vector<32x256xf32>
    %12 = tpu.matmul %9, %11, %cst_10 {dimension_numbers = #tpu.dot_dimension_numbers<[1], [0], [0], [1], [0, 0, 1, 1], [], []>} : vector<32x64xbf16>, vector<64x256xbf16>, vector<32x256xf32> -> vector<32x256xf32>
    %13 = arith.addf %8, %12 : vector<32x256xf32>
    %14 = vector.extract_strided_slice %4 {offsets = [64, 0], sizes = [32, 64], strides = [1, 1]} : vector<288x64xbf16> to vector<32x64xbf16>
    %c2 = arith.constant 2 : index
    %c0_11 = arith.constant 0 : index
    %c0_12 = arith.constant 0 : index
    %15 = vector.load %arg3[%c2, %c0_11, %c0_12] : memref<9x64x256xbf16, #tpu.memory_space<vmem>>, vector<1x64x256xbf16>
    %16 = vector.shape_cast %15 : vector<1x64x256xbf16> to vector<64x256xbf16>
    %cst_13 = arith.constant dense<0.000000e+00> : vector<32x256xf32>
    %17 = tpu.matmul %14, %16, %cst_13 {dimension_numbers = #tpu.dot_dimension_numbers<[1], [0], [0], [1], [0, 0, 1, 1], [], []>} : vector<32x64xbf16>, vector<64x256xbf16>, vector<32x256xf32> -> vector<32x256xf32>
    %18 = arith.addf %13, %17 : vector<32x256xf32>
    %19 = vector.extract_strided_slice %4 {offsets = [96, 0], sizes = [32, 64], strides = [1, 1]} : vector<288x64xbf16> to vector<32x64xbf16>
    %c3 = arith.constant 3 : index
    %c0_14 = arith.constant 0 : index
    %c0_15 = arith.constant 0 : index
    %20 = vector.load %arg3[%c3, %c0_14, %c0_15] : memref<9x64x256xbf16, #tpu.memory_space<vmem>>, vector<1x64x256xbf16>
    %21 = vector.shape_cast %20 : vector<1x64x256xbf16> to vector<64x256xbf16>
    %cst_16 = arith.constant dense<0.000000e+00> : vector<32x256xf32>
    %22 = tpu.matmul %19, %21, %cst_16 {dimension_numbers = #tpu.dot_dimension_numbers<[1], [0], [0], [1], [0, 0, 1, 1], [], []>} : vector<32x64xbf16>, vector<64x256xbf16>, vector<32x256xf32> -> vector<32x256xf32>
    %23 = arith.addf %18, %22 : vector<32x256xf32>
    %24 = vector.extract_strided_slice %4 {offsets = [128, 0], sizes = [32, 64], strides = [1, 1]} : vector<288x64xbf16> to vector<32x64xbf16>
    %c4 = arith.constant 4 : index
    %c0_17 = arith.constant 0 : index
    %c0_18 = arith.constant 0 : index
    %25 = vector.load %arg3[%c4, %c0_17, %c0_18] : memref<9x64x256xbf16, #tpu.memory_space<vmem>>, vector<1x64x256xbf16>
    %26 = vector.shape_cast %25 : vector<1x64x256xbf16> to vector<64x256xbf16>
    %cst_19 = arith.constant dense<0.000000e+00> : vector<32x256xf32>
    %27 = tpu.matmul %24, %26, %cst_19 {dimension_numbers = #tpu.dot_dimension_numbers<[1], [0], [0], [1], [0, 0, 1, 1], [], []>} : vector<32x64xbf16>, vector<64x256xbf16>, vector<32x256xf32> -> vector<32x256xf32>
    %28 = arith.addf %23, %27 : vector<32x256xf32>
    %29 = vector.extract_strided_slice %4 {offsets = [160, 0], sizes = [32, 64], strides = [1, 1]} : vector<288x64xbf16> to vector<32x64xbf16>
    %c5 = arith.constant 5 : index
    %c0_20 = arith.constant 0 : index
    %c0_21 = arith.constant 0 : index
    %30 = vector.load %arg3[%c5, %c0_20, %c0_21] : memref<9x64x256xbf16, #tpu.memory_space<vmem>>, vector<1x64x256xbf16>
    %31 = vector.shape_cast %30 : vector<1x64x256xbf16> to vector<64x256xbf16>
    %cst_22 = arith.constant dense<0.000000e+00> : vector<32x256xf32>
    %32 = tpu.matmul %29, %31, %cst_22 {dimension_numbers = #tpu.dot_dimension_numbers<[1], [0], [0], [1], [0, 0, 1, 1], [], []>} : vector<32x64xbf16>, vector<64x256xbf16>, vector<32x256xf32> -> vector<32x256xf32>
    %33 = arith.addf %28, %32 : vector<32x256xf32>
    %34 = vector.extract_strided_slice %4 {offsets = [192, 0], sizes = [32, 64], strides = [1, 1]} : vector<288x64xbf16> to vector<32x64xbf16>
    %c6 = arith.constant 6 : index
    %c0_23 = arith.constant 0 : index
    %c0_24 = arith.constant 0 : index
    %35 = vector.load %arg3[%c6, %c0_23, %c0_24] : memref<9x64x256xbf16, #tpu.memory_space<vmem>>, vector<1x64x256xbf16>
    %36 = vector.shape_cast %35 : vector<1x64x256xbf16> to vector<64x256xbf16>
    %cst_25 = arith.constant dense<0.000000e+00> : vector<32x256xf32>
    %37 = tpu.matmul %34, %36, %cst_25 {dimension_numbers = #tpu.dot_dimension_numbers<[1], [0], [0], [1], [0, 0, 1, 1], [], []>} : vector<32x64xbf16>, vector<64x256xbf16>, vector<32x256xf32> -> vector<32x256xf32>
    %38 = arith.addf %33, %37 : vector<32x256xf32>
    %39 = vector.extract_strided_slice %4 {offsets = [224, 0], sizes = [32, 64], strides = [1, 1]} : vector<288x64xbf16> to vector<32x64xbf16>
    %c7 = arith.constant 7 : index
    %c0_26 = arith.constant 0 : index
    %c0_27 = arith.constant 0 : index
    %40 = vector.load %arg3[%c7, %c0_26, %c0_27] : memref<9x64x256xbf16, #tpu.memory_space<vmem>>, vector<1x64x256xbf16>
    %41 = vector.shape_cast %40 : vector<1x64x256xbf16> to vector<64x256xbf16>
    %cst_28 = arith.constant dense<0.000000e+00> : vector<32x256xf32>
    %42 = tpu.matmul %39, %41, %cst_28 {dimension_numbers = #tpu.dot_dimension_numbers<[1], [0], [0], [1], [0, 0, 1, 1], [], []>} : vector<32x64xbf16>, vector<64x256xbf16>, vector<32x256xf32> -> vector<32x256xf32>
    %43 = arith.addf %38, %42 : vector<32x256xf32>
    %44 = vector.extract_strided_slice %4 {offsets = [256, 0], sizes = [32, 64], strides = [1, 1]} : vector<288x64xbf16> to vector<32x64xbf16>
    %c8 = arith.constant 8 : index
    %c0_29 = arith.constant 0 : index
    %c0_30 = arith.constant 0 : index
    %45 = vector.load %arg3[%c8, %c0_29, %c0_30] : memref<9x64x256xbf16, #tpu.memory_space<vmem>>, vector<1x64x256xbf16>
    %46 = vector.shape_cast %45 : vector<1x64x256xbf16> to vector<64x256xbf16>
    %cst_31 = arith.constant dense<0.000000e+00> : vector<32x256xf32>
    %47 = tpu.matmul %44, %46, %cst_31 {dimension_numbers = #tpu.dot_dimension_numbers<[1], [0], [0], [1], [0, 0, 1, 1], [], []>} : vector<32x64xbf16>, vector<64x256xbf16>, vector<32x256xf32> -> vector<32x256xf32>
    %48 = arith.addf %43, %47 : vector<32x256xf32>
    %cst_32 = arith.constant dense<0.000000e+00> : vector<32xf32>
    %49 = vector.multi_reduction <add>, %48, %cst_32 [1] : vector<32x256xf32> to vector<32xf32>
    %50 = vector.shape_cast %49 : vector<32xf32> to vector<32x1xf32>
    %cst_33 = arith.constant 2.560000e+02 : f32
    %51 = vector.broadcast %cst_33 : f32 to vector<32x1xf32>
    %52 = arith.divf %50, %51 : vector<32x1xf32>
    %53 = vector.broadcast %52 : vector<32x1xf32> to vector<32x256xf32>
    %54 = arith.subf %48, %53 : vector<32x256xf32>
    %55 = arith.mulf %54, %54 : vector<32x256xf32>
    %cst_34 = arith.constant dense<0.000000e+00> : vector<32xf32>
    %56 = vector.multi_reduction <add>, %55, %cst_34 [1] : vector<32x256xf32> to vector<32xf32>
    %57 = vector.shape_cast %56 : vector<32xf32> to vector<32x1xf32>
    %cst_35 = arith.constant 2.560000e+02 : f32
    %58 = vector.broadcast %cst_35 : f32 to vector<32x1xf32>
    %59 = arith.divf %57, %58 : vector<32x1xf32>
    %60 = vector.broadcast %52 : vector<32x1xf32> to vector<32x256xf32>
    %61 = arith.subf %48, %60 : vector<32x256xf32>
    %cst_36 = arith.constant 9.99999974E-6 : f32
    %62 = vector.broadcast %cst_36 : f32 to vector<32x1xf32>
    %63 = arith.addf %59, %62 : vector<32x1xf32>
    %64 = math.rsqrt %63 : vector<32x1xf32>
    %65 = vector.broadcast %64 : vector<32x1xf32> to vector<32x256xf32>
    %66 = arith.mulf %61, %65 : vector<32x256xf32>
    %c0_37 = arith.constant 0 : index
    %c0_38 = arith.constant 0 : index
    %67 = vector.load %arg4[%c0_37, %c0_38] : memref<32x2xf32, #tpu.memory_space<vmem>>, vector<32x1xf32>
    %68 = vector.broadcast %67 : vector<32x1xf32> to vector<32x256xf32>
    %69 = arith.mulf %66, %68 : vector<32x256xf32>
    %c0_39 = arith.constant 0 : index
    %c1_40 = arith.constant 1 : index
    %70 = vector.load %arg4[%c0_39, %c1_40] : memref<32x2xf32, #tpu.memory_space<vmem>>, vector<32x1xf32>
    %71 = vector.broadcast %70 : vector<32x1xf32> to vector<32x256xf32>
    %72 = arith.addf %69, %71 : vector<32x256xf32>
    %cst_41 = arith.constant 0.000000e+00 : f32
    %73 = vector.broadcast %cst_41 : f32 to vector<32x256xf32>
    %74 = arith.maximumf %72, %73 : vector<32x256xf32>
    %c0_42 = arith.constant 0 : index
    %c0_43 = arith.constant 0 : index
    %75 = vector.load %arg5[%c0_42, %c0_43] : memref<9x32xf32, #tpu.memory_space<vmem>>, vector<9x32xf32>
    %cst_44 = arith.constant dense<0.000000e+00> : vector<9x256xf32>
    %76 = tpu.matmul %75, %74, %cst_44 {dimension_numbers = #tpu.dot_dimension_numbers<[1], [0], [0], [1], [0, 0, 1, 1], [], []>} : vector<9x32xf32>, vector<32x256xf32>, vector<9x256xf32> -> vector<9x256xf32>
    %c0_45 = arith.constant 0 : index
    %c0_46 = arith.constant 0 : index
    %77 = vector.load %arg6[%c0_45, %c0_46] : memref<9x256xf32, #tpu.memory_space<vmem>>, vector<9x256xf32>
    %78 = vector.extract_strided_slice %76 {offsets = [0, 0], sizes = [1, 256], strides = [1, 1]} : vector<9x256xf32> to vector<1x256xf32>
    %c17_i32 = arith.constant 17 : i32
    %79 = tpu.dynamic_rotate %78 by %c17_i32 dim 1 : vector<1x256xf32>, i32 -> vector<1x256xf32>
    %80 = vector.extract_strided_slice %77 {offsets = [0, 0], sizes = [1, 256], strides = [1, 1]} : vector<9x256xf32> to vector<1x256xf32>
    %81 = arith.mulf %79, %80 : vector<1x256xf32>
    %82 = vector.extract_strided_slice %76 {offsets = [1, 0], sizes = [1, 256], strides = [1, 1]} : vector<9x256xf32> to vector<1x256xf32>
    %c16_i32 = arith.constant 16 : i32
    %83 = tpu.dynamic_rotate %82 by %c16_i32 dim 1 : vector<1x256xf32>, i32 -> vector<1x256xf32>
    %84 = vector.extract_strided_slice %77 {offsets = [1, 0], sizes = [1, 256], strides = [1, 1]} : vector<9x256xf32> to vector<1x256xf32>
    %85 = arith.mulf %83, %84 : vector<1x256xf32>
    %86 = arith.addf %81, %85 : vector<1x256xf32>
    %87 = vector.extract_strided_slice %76 {offsets = [2, 0], sizes = [1, 256], strides = [1, 1]} : vector<9x256xf32> to vector<1x256xf32>
    %c15_i32 = arith.constant 15 : i32
    %88 = tpu.dynamic_rotate %87 by %c15_i32 dim 1 : vector<1x256xf32>, i32 -> vector<1x256xf32>
    %89 = vector.extract_strided_slice %77 {offsets = [2, 0], sizes = [1, 256], strides = [1, 1]} : vector<9x256xf32> to vector<1x256xf32>
    %90 = arith.mulf %88, %89 : vector<1x256xf32>
    %91 = arith.addf %86, %90 : vector<1x256xf32>
    %92 = vector.extract_strided_slice %76 {offsets = [3, 0], sizes = [1, 256], strides = [1, 1]} : vector<9x256xf32> to vector<1x256xf32>
    %c1_i32 = arith.constant 1 : i32
    %93 = tpu.dynamic_rotate %92 by %c1_i32 dim 1 : vector<1x256xf32>, i32 -> vector<1x256xf32>
    %94 = vector.extract_strided_slice %77 {offsets = [3, 0], sizes = [1, 256], strides = [1, 1]} : vector<9x256xf32> to vector<1x256xf32>
    %95 = arith.mulf %93, %94 : vector<1x256xf32>
    %96 = arith.addf %91, %95 : vector<1x256xf32>
    %97 = vector.extract_strided_slice %76 {offsets = [4, 0], sizes = [1, 256], strides = [1, 1]} : vector<9x256xf32> to vector<1x256xf32>
    %c0_i32 = arith.constant 0 : i32
    %98 = tpu.dynamic_rotate %97 by %c0_i32 dim 1 : vector<1x256xf32>, i32 -> vector<1x256xf32>
    %99 = vector.extract_strided_slice %77 {offsets = [4, 0], sizes = [1, 256], strides = [1, 1]} : vector<9x256xf32> to vector<1x256xf32>
    %100 = arith.mulf %98, %99 : vector<1x256xf32>
    %101 = arith.addf %96, %100 : vector<1x256xf32>
    %102 = vector.extract_strided_slice %76 {offsets = [5, 0], sizes = [1, 256], strides = [1, 1]} : vector<9x256xf32> to vector<1x256xf32>
    %c255_i32 = arith.constant 255 : i32
    %103 = tpu.dynamic_rotate %102 by %c255_i32 dim 1 : vector<1x256xf32>, i32 -> vector<1x256xf32>
    %104 = vector.extract_strided_slice %77 {offsets = [5, 0], sizes = [1, 256], strides = [1, 1]} : vector<9x256xf32> to vector<1x256xf32>
    %105 = arith.mulf %103, %104 : vector<1x256xf32>
    %106 = arith.addf %101, %105 : vector<1x256xf32>
    %107 = vector.extract_strided_slice %76 {offsets = [6, 0], sizes = [1, 256], strides = [1, 1]} : vector<9x256xf32> to vector<1x256xf32>
    %c241_i32 = arith.constant 241 : i32
    %108 = tpu.dynamic_rotate %107 by %c241_i32 dim 1 : vector<1x256xf32>, i32 -> vector<1x256xf32>
    %109 = vector.extract_strided_slice %77 {offsets = [6, 0], sizes = [1, 256], strides = [1, 1]} : vector<9x256xf32> to vector<1x256xf32>
    %110 = arith.mulf %108, %109 : vector<1x256xf32>
    %111 = arith.addf %106, %110 : vector<1x256xf32>
    %112 = vector.extract_strided_slice %76 {offsets = [7, 0], sizes = [1, 256], strides = [1, 1]} : vector<9x256xf32> to vector<1x256xf32>
    %c240_i32 = arith.constant 240 : i32
    %113 = tpu.dynamic_rotate %112 by %c240_i32 dim 1 : vector<1x256xf32>, i32 -> vector<1x256xf32>
    %114 = vector.extract_strided_slice %77 {offsets = [7, 0], sizes = [1, 256], strides = [1, 1]} : vector<9x256xf32> to vector<1x256xf32>
    %115 = arith.mulf %113, %114 : vector<1x256xf32>
    %116 = arith.addf %111, %115 : vector<1x256xf32>
    %117 = vector.extract_strided_slice %76 {offsets = [8, 0], sizes = [1, 256], strides = [1, 1]} : vector<9x256xf32> to vector<1x256xf32>
    %c239_i32 = arith.constant 239 : i32
    %118 = tpu.dynamic_rotate %117 by %c239_i32 dim 1 : vector<1x256xf32>, i32 -> vector<1x256xf32>
    %119 = vector.extract_strided_slice %77 {offsets = [8, 0], sizes = [1, 256], strides = [1, 1]} : vector<9x256xf32> to vector<1x256xf32>
    %120 = arith.mulf %118, %119 : vector<1x256xf32>
    %121 = arith.addf %116, %120 : vector<1x256xf32>
    %c0_47 = arith.constant 0 : index
    %122 = memref.load %arg7[%c0_47] : memref<1xf32, #tpu.memory_space<smem>>
    %123 = vector.broadcast %122 : f32 to vector<1x256xf32>
    %124 = arith.addf %121, %123 : vector<1x256xf32>
    %125 = arith.negf %124 : vector<1x256xf32>
    %126 = math.exp %125 : vector<1x256xf32>
    %cst_48 = arith.constant 1.000000e+00 : f32
    %127 = vector.broadcast %cst_48 : f32 to vector<1x256xf32>
    %128 = arith.addf %127, %126 : vector<1x256xf32>
    %129 = arith.divf %127, %128 : vector<1x256xf32>
    %c0_49 = arith.constant 0 : index
    %c0_50 = arith.constant 0 : index
    %c0_51 = arith.constant 0 : index
    %130 = vector.load %arg8[%c0_49, %c0_50, %c0_51] : memref<1x1x256xf32, #tpu.memory_space<vmem>>, vector<1x1x256xf32>
    %131 = vector.shape_cast %130 : vector<1x1x256xf32> to vector<1x256xf32>
    %132 = vector.shape_cast %129 : vector<1x256xf32> to vector<1x1x256xf32>
    tpu.vector_store %arg8[%c0_49, %c0_50, %c0_51], %132 {strides = array<i32>} : memref<1x1x256xf32, #tpu.memory_space<vmem>>, vector<1x1x256xf32>,
    %cst_52 = arith.constant dense<0xFF800000> : vector<1xf32>
    %133 = vector.multi_reduction <maximumf>, %129, %cst_52 [1] : vector<1x256xf32> to vector<1xf32>
    %134 = vector.shape_cast %133 : vector<1xf32> to vector<1x1xf32>
    %c0_53 = arith.constant 0 : index
    %c0_54 = arith.constant 0 : index
    %c0_55 = arith.constant 0 : index
    %135 = vector.load %arg9[%c0_53, %c0_54, %c0_55] : memref<1x1x1xf32, #tpu.memory_space<vmem>>, vector<1x1x1xf32>
    %136 = vector.shape_cast %135 : vector<1x1x1xf32> to vector<1x1xf32>
    %137 = vector.shape_cast %134 : vector<1x1xf32> to vector<1x1x1xf32>
    tpu.vector_store %arg9[%c0_53, %c0_54, %c0_55], %137 {strides = array<i32>} : memref<1x1x1xf32, #tpu.memory_space<vmem>>, vector<1x1x1xf32>,
    return
  }
  func.func @transform_0(%arg0: i32) -> (i32, i32, i32) {
    %c0_i32 = arith.constant 0 : i32
    %c0_i32_0 = arith.constant 0 : i32
    %c0_i32_1 = arith.constant 0 : i32
    return %arg0, %c0_i32, %c0_i32_0 : i32, i32, i32
  }
  func.func @transform_1(%arg0: i32) -> (i32, i32) {
    %c0_i32 = arith.constant 0 : i32
    %c0_i32_0 = arith.constant 0 : i32
    %c0_i32_1 = arith.constant 0 : i32
    return %c0_i32, %c0_i32_0 : i32, i32
  }
  func.func @transform_2(%arg0: i32) -> (i32, i32, i32) {
    %c0_i32 = arith.constant 0 : i32
    %c0_i32_0 = arith.constant 0 : i32
    %c0_i32_1 = arith.constant 0 : i32
    %c0_i32_2 = arith.constant 0 : i32
    return %c0_i32, %c0_i32_0, %c0_i32_1 : i32, i32, i32
  }
  func.func @transform_3(%arg0: i32) -> (i32, i32) {
    %c0_i32 = arith.constant 0 : i32
    %c0_i32_0 = arith.constant 0 : i32
    %c0_i32_1 = arith.constant 0 : i32
    return %c0_i32, %c0_i32_0 : i32, i32
  }
  func.func @transform_4(%arg0: i32) -> (i32, i32) {
    %c0_i32 = arith.constant 0 : i32
    %c0_i32_0 = arith.constant 0 : i32
    %c0_i32_1 = arith.constant 0 : i32
    return %c0_i32, %c0_i32_0 : i32, i32
  }
  func.func @transform_5(%arg0: i32) -> (i32, i32) {
    %c0_i32 = arith.constant 0 : i32
    %c0_i32_0 = arith.constant 0 : i32
    %c0_i32_1 = arith.constant 0 : i32
    return %c0_i32, %c0_i32_0 : i32, i32
  }
  func.func @transform_6(%arg0: i32) -> i32 {
    %c0_i32 = arith.constant 0 : i32
    %c0_i32_0 = arith.constant 0 : i32
    return %c0_i32 : i32
  }
  func.func @transform_7(%arg0: i32) -> (i32, i32, i32) {
    %c0_i32 = arith.constant 0 : i32
    %c0_i32_0 = arith.constant 0 : i32
    %c0_i32_1 = arith.constant 0 : i32
    return %arg0, %c0_i32, %c0_i32_0 : i32, i32, i32
  }
  func.func @transform_8(%arg0: i32) -> (i32, i32, i32) {
    %c0_i32 = arith.constant 0 : i32
    %c0_i32_0 = arith.constant 0 : i32
    %c0_i32_1 = arith.constant 0 : i32
    return %arg0, %c0_i32, %c0_i32_0 : i32, i32, i32
  }
}

</mosaic_0001>

<bundles_post_ra>
// kernel: resnet_head.1
= control target key start
LH: loop header
LB: loop body
LE: loop exit
PB: predicated region body
PF: predicated region fallthrough
CT: control target
= control target key end

     0   :  { %s3693_s29 = smov 0   ;;  %s4505_s0 = inlined_call_operand.vmem [shape: bf16[2,448,64], index: 0, kind: input, shape index: {}]   ;;  %s4506_s1 = inlined_call_operand.vmem [shape: bf16[288,448], index: 1, kind: input, shape index: {}]   ;;  %s4507_s2 = inlined_call_operand.vmem [shape: bf16[9,64,256], index: 2, kind: input, shape index: {}]   ;;  %s4508_s3 = inlined_call_operand.vmem [shape: f32[32,2], index: 3, kind: input, shape index: {}]   ;;  %s4509_s4 = inlined_call_operand.vmem [shape: f32[9,32], index: 4, kind: input, shape index: {}]   ;;  %s4510_s5 = inlined_call_operand.vmem [shape: f32[9,256], index: 5, kind: input, shape index: {}]   ;;  %s4511_s6 = inlined_call_operand.<no memory space> [shape: f32[1], index: 6, kind: input, shape index: {}]   ;;  %s4512_s7 = inlined_call_operand.vmem [shape: f32[2,1,256], index: 7, kind: output, shape index: {0}]   ;;  %s4513_s8 = inlined_call_operand.vmem [shape: f32[2,1,1], index: 8, kind: output, shape index: {1}]  }
   0x1   :  { %14 = sst [smem:[#allocation2]] %s4511_s6 }
   0x2 LB: > { %s2903_s30 = sadd.s32 4294967295, %s3631_s29   ;;  %p2907_p0 = scmp.ge.s32.totalorder %s3631_s29, 1  ;;  %s3631_s29 = sphi %s3693_s29, %s20_s29  }
   0x3   : > { %p266_p1 = scmp.lt.s32.totalorder %s3631_s29, 3 }
   0x5   : > { %p267_p2 = pnand %p2907_p0, %p266_p1 }
   0x6   : > { %p302_p3 = scmp.lt.s32.totalorder (!%p267_p2), %s2903_s30, 1  ;;  %v3633_v0 = vmov (!%p267_p2), 0   ;;  %v3383_v1 = vld [vmem:[%s4506_s1 + $0x4] ss:$16 sps:$4 sm:$0xff] (!%p267_p2)   ;;  %vm953_vm0 = vcmask (!%p267_p2), 523264   ;;  %vm2538_vm1 = vcmask (!%p267_p2), 261120  }
   0x7   : > { %270 = sbr.rel (%p267_p2) target bundleno = 1738 (0x6ca), region = 48  ;;  %1008 = vmatprep.subr.bf16.mxu0 (!%p267_p2), %v3633_v0  ;;  %3196 = vmatprep.subr.bf16.mxu1 (!%p267_p2), %v3633_v0  ;;  %v3424_v18 = vld [vmem:[%s4506_s1 + $0x12c] ss:$16 sps:$4 sm:$0xff] (!%p267_p2)   ;;  %v3381_v31 = vld [vmem:[%s4506_s1] ss:$16 sps:$4 sm:$0xff] (!%p267_p2)   ;;  %s3636_s18 = smov (!%p267_p2), 17  }
   0x8   : > { %3360 = vset.pattern.permute.xlu1 (!%p267_p2), %v3633_v0  ;;  %3359 = vset.pattern.permute.xlu0 (!%p267_p2), %v3633_v0  ;;  %v3422_v32 = vld [vmem:[%s4506_s1 + $0x128] ss:$16 sps:$4 sm:$0xff] (!%p267_p2)   ;;  %v3385_v33 = vld [vmem:[%s4506_s1 + $0x24] ss:$16 sps:$4 sm:$0xff] (!%p267_p2)   ;;  %v3428_v34 = vld [vmem:[%s4506_s1 + $0x14c] ss:$16 sps:$4 sm:$0xff] (!%p267_p2)  }
   0x9   : > { %1040 = vmatprep.mubr.bf16.mxu0 (!%p267_p2), %v3383_v1  ;;  %3019 = vmatprep.mubr.msk.bf16.mxu1 (!%p267_p2), %vm953_vm0, %v3424_v18  ;;  %v3387_v35 = vld [vmem:[%s4506_s1 + $0x20] ss:$16 sps:$4 sm:$0xff] (!%p267_p2)   ;;  %v3431_v36 = vld [vmem:[%s4506_s1 + $0x148] ss:$16 sps:$4 sm:$0xff] (!%p267_p2)   ;;  %v3388_v37 = vld [vmem:[%s4506_s1 + $0x44] ss:$16 sps:$4 sm:$0xff] (!%p267_p2)  }
   0xa   : > { %v3434_v38 = vld [vmem:[%s4506_s1 + $0x16c] ss:$16 sps:$4 sm:$0xff] (!%p267_p2)   ;;  %v3390_v39 = vld [vmem:[%s4506_s1 + $0x40] ss:$16 sps:$4 sm:$0xff] (!%p267_p2)   ;;  %v3437_v40 = vld [vmem:[%s4506_s1 + $0x168] ss:$16 sps:$4 sm:$0xff] (!%p267_p2)  }
   0xb   : > { %v3392_v41 = vld [vmem:[%s4506_s1 + $0x64] ss:$16 sps:$4 sm:$0xff] (!%p267_p2)   ;;  %v3440_v42 = vld [vmem:[%s4506_s1 + $0x18c] ss:$16 sps:$4 sm:$0xff] (!%p267_p2)   ;;  %v3394_v43 = vld [vmem:[%s4506_s1 + $0x60] ss:$16 sps:$4 sm:$0xff] (!%p267_p2)  }
   0xc   : > { %v3443_v44 = vld [vmem:[%s4506_s1 + $0x188] ss:$16 sps:$4 sm:$0xff] (!%p267_p2)   ;;  %v3396_v45 = vld [vmem:[%s4506_s1 + $0x84] ss:$16 sps:$4 sm:$0xff] (!%p267_p2)   ;;  %v3446_v46 = vld [vmem:[%s4506_s1 + $0x1ac] ss:$16 sps:$4 sm:$0xff] (!%p267_p2)  }
   0xd   : > { %v3398_v47 = vld [vmem:[%s4506_s1 + $0x80] ss:$16 sps:$4 sm:$0xff] (!%p267_p2)   ;;  %v3449_v48 = vld [vmem:[%s4506_s1 + $0x1a8] ss:$16 sps:$4 sm:$0xff] (!%p267_p2)   ;;  %v3400_v49 = vld [vmem:[%s4506_s1 + $0xa4] ss:$16 sps:$4 sm:$0xff] (!%p267_p2)  }
   0xe   : > { %s4515_s30 = smov (!%p302_p3, %s2903_s30), 1  ;;  %v3452_v50 = vld [vmem:[%s4506_s1 + $0x1cc] ss:$16 sps:$4 sm:$0xff]   ;;  %v3402_v51 = vld [vmem:[%s4506_s1 + $0xa0] ss:$16 sps:$4 sm:$0xff]   ;;  %s3637_s19 = smov 16  }
   0xf   : > { %s3338_s10 = smul.u32 224, %s4515_s30  ;;  %v3455_v52 = vld [vmem:[%s4506_s1 + $0x1c8] ss:$16 sps:$4 sm:$0xff]   ;;  %v3405_v53 = vld [vmem:[%s4506_s1 + $0xc4] ss:$16 sps:$4 sm:$0xff]   ;;  %s3638_s20 = smov 15  }
  0x10   : > { %v3458_v54 = vld [vmem:[%s4506_s1 + $0x1ec] ss:$16 sps:$4 sm:$0xff]   ;;  %v3407_v55 = vld [vmem:[%s4506_s1 + $0xc0] ss:$16 sps:$4 sm:$0xff]   ;;  %v3461_v56 = vld [vmem:[%s4506_s1 + $0x1e8] ss:$16 sps:$4 sm:$0xff]  }
  0x11   : > { %s3714_s13 = scalar_lea.vmem %s4505_s0, %s3338_s10  ;;  %v3410_v57 = vld [vmem:[%s4506_s1 + $0xe4] ss:$16 sps:$4 sm:$0xff]   ;;  %v3464_v58 = vld [vmem:[%s4506_s1 + $0x20c] ss:$16 sps:$4 sm:$0xff]   ;;  %v3412_v59 = vld [vmem:[%s4506_s1 + $0xe0] ss:$16 sps:$4 sm:$0xff]  }
  0x12   : > { %v3365_v2 = vld [vmem:[%s3714_s13] sm:$0xff]   ;;  %v3366_v3 = vld [vmem:[%s3714_s13 + $0x8] sm:$0xff]   ;;  %v3367_v4 = vld [vmem:[%s3714_s13 + $0x10] sm:$0xff]   ;;  %s3639_s21 = smov 1   ;;  %s3640_s22 = smov 127   ;;  %vm2817_vm10 = vcmask 1040384  }
  0x13   : > { %1009 = vmatpush1.bf16.msra.mxu0 %v3365_v2  ;;  %v3368_v5 = vld [vmem:[%s3714_s13 + $0x18] sm:$0xff]   ;;  %v3369_v6 = vld [vmem:[%s3714_s13 + $0x20] sm:$0xff]   ;;  %v3370_v8 = vld [vmem:[%s3714_s13 + $0x28] sm:$0xff]   ;;  %s3641_s23 = smov 113   ;;  %s3642_s24 = smov 112   ;;  %vm2823_vm12 = vcmask 0  }
  0x14   : > { %1010 = vmatprep.subr.bf16.mxu0 %v3633_v0  ;;  %v3726_v7 = vld [vmem:[%s3714_s13 + $0x80] sm:$0xff]   ;;  %v3730_v9 = vld [vmem:[%s3714_s13 + $0x88] sm:$0xff]   ;;  %v3371_v10 = vld [vmem:[%s3714_s13 + $0x30] sm:$0xff]   ;;  %s3643_s25 = smov 111   ;;  %s2778_s9 = sld [smem:[#allocation2]] }
  0x15   : > { %3208 = vmatpush1.bf16.msra.mxu1 %v3726_v7  ;;  %v3738_v11 = vld [vmem:[%s3714_s13 + $0x90] sm:$0xff]   ;;  %v3372_v12 = vld [vmem:[%s3714_s13 + $0x38] sm:$0xff]   ;;  %v3373_v14 = vld [vmem:[%s3714_s13 + $0x40] sm:$0xff]   ;;  %s2909_s14 = sshll.u32 %s4515_s30, 1 }
  0x16   : > { %3197 = vmatprep.subr.bf16.mxu1 %v3633_v0  ;;  %v3745_v13 = vld [vmem:[%s3714_s13 + $0x98] sm:$0xff]   ;;  %v3752_v15 = vld [vmem:[%s3714_s13 + $0xa0] sm:$0xff]   ;;  %v3374_v16 = vld [vmem:[%s3714_s13 + $0x48] sm:$0xff]   ;;  %s310_s17 = scalar_lea.vmem %s4512_s7, %s2909_s14 }
  0x17   : > { %1011 = vmatpush1.bf16.msra.mxu0 %v3366_v3  ;;  %v3759_v17 = vld [vmem:[%s3714_s13 + $0xa8] sm:$0xff]   ;;  %v3375_v19 = vld [vmem:[%s3714_s13 + $0x50] sm:$0xff]   ;;  %v3376_v21 = vld [vmem:[%s3714_s13 + $0x58] sm:$0xff]  }
  0x18   : > { %1012 = vmatprep.subr.bf16.mxu0 %v3633_v0  ;;  %v3770_v20 = vld [vmem:[%s3714_s13 + $0xb0] sm:$0xff]   ;;  %v3777_v22 = vld [vmem:[%s3714_s13 + $0xb8] sm:$0xff]   ;;  %v3377_v23 = vld [vmem:[%s3714_s13 + $0x60] sm:$0xff]  }
  0x19   : > { %3209 = vmatpush1.bf16.msra.mxu1 %v3730_v9  ;;  %v3784_v24 = vld [vmem:[%s3714_s13 + $0xc0] sm:$0xff]   ;;  %v3378_v25 = vld [vmem:[%s3714_s13 + $0x68] sm:$0xff]   ;;  %v3379_v27 = vld [vmem:[%s3714_s13 + $0x70] sm:$0xff]  }
  0x1a   : > { %3198 = vmatprep.subr.bf16.mxu1 %v3633_v0  ;;  %v3791_v26 = vld [vmem:[%s3714_s13 + $0xc8] sm:$0xff]   ;;  %v3797_v28 = vld [vmem:[%s3714_s13 + $0xd0] sm:$0xff]   ;;  %v3380_v29 = vld [vmem:[%s3714_s13 + $0x78] sm:$0xff]  }
  0x1b   : > { %1013 = vmatpush1.bf16.msra.mxu0 %v3367_v4  ;;  %v3805_v30 = vld [vmem:[%s3714_s13 + $0xd8] sm:$0xff]   ;;  %v3415_v61 = vld [vmem:[%s4506_s1 + $0x104] ss:$16 sps:$4 sm:$0xff]   ;;  %v3417_v63 = vld [vmem:[%s4506_s1 + $0x100] ss:$16 sps:$4 sm:$0xff]  }
  0x1c   : > { %1014 = vmatprep.subr.bf16.mxu0 %v3633_v0  ;;  %v3467_v60 = vld [vmem:[%s4506_s1 + $0x208] ss:$16 sps:$4 sm:$0xff]   ;;  %v3470_v62 = vld [vmem:[%s4506_s1 + $0x22c] ss:$16 sps:$4 sm:$0xff]   ;;  %v3420_v2 = vld [vmem:[%s4506_s1 + $0x124] ss:$16 sps:$4 sm:$0xff]  }
  0x1d   : > { %3210 = vmatpush1.bf16.msra.mxu1 %v3738_v11  ;;  %v3473_v1 = vld [vmem:[%s4506_s1 + $0x228] ss:$16 sps:$4 sm:$0xff]   ;;  %v3425_v3 = vld [vmem:[%s4506_s1 + $0x120] ss:$16 sps:$4 sm:$0xff]   ;;  %v3426_v4 = vld [vmem:[%s4506_s1 + $0x144] ss:$16 sps:$4 sm:$0xff]  }
  0x1e   : > { %3199 = vmatprep.subr.bf16.mxu1 %v3633_v0  ;;  %v3468_v18 = vld [vmem:[%s4506_s1 + $0x224] ss:$16 sps:$4 sm:$0xff]  }
  0x1f   : > { %1015 = vmatpush1.bf16.msra.mxu0 %v3368_v5  ;;  %v3430_v5 = vld [vmem:[%s4506_s1 + $0x140] ss:$16 sps:$4 sm:$0xff]  }
  0x20   : > { %1016 = vmatprep.subr.bf16.mxu0 %v3633_v0 }
  0x21   : > { %3211 = vmatpush1.bf16.msra.mxu1 %v3745_v13 }
  0x22   : > { %3200 = vmatprep.subr.bf16.mxu1 %v3633_v0 }
  0x23   : > { %1017 = vmatpush1.bf16.msra.mxu0 %v3369_v6  ;;  %v3432_v6 = vld [vmem:[%s4506_s1 + $0x164] ss:$16 sps:$4 sm:$0xff]  }
  0x24   : > { %1018 = vmatprep.subr.bf16.mxu0 %v3633_v0 }
  0x25   : > { %3212 = vmatpush1.bf16.msra.mxu1 %v3752_v15 }
  0x26   : > { %3201 = vmatprep.subr.bf16.mxu1 %v3633_v0 }
  0x27   : > { %1019 = vmatpush1.bf16.msra.mxu0 %v3370_v8  ;;  %v3438_v8 = vld [vmem:[%s4506_s1 + $0x184] ss:$16 sps:$4 sm:$0xff]  }
  0x28   : > { %1020 = vmatprep.subr.bf16.mxu0 %v3633_v0 }
  0x29   : > { %3213 = vmatpush1.bf16.msra.mxu1 %v3759_v17 }
  0x2a   : > { %3202 = vmatprep.subr.bf16.mxu1 %v3633_v0 }
  0x2b   : > { %1021 = vmatpush1.bf16.msra.mxu0 %v3371_v10  ;;  %v3444_v10 = vld [vmem:[%s4506_s1 + $0x1a4] ss:$16 sps:$4 sm:$0xff]  }
  0x2c   : > { %1022 = vmatprep.subr.bf16.mxu0 %v3633_v0 }
  0x2d   : > { %3214 = vmatpush1.bf16.msra.mxu1 %v3770_v20 }
  0x2e   : > { %3203 = vmatprep.subr.bf16.mxu1 %v3633_v0 }
  0x2f   : > { %1023 = vmatpush1.bf16.msra.mxu0 %v3372_v12  ;;  %v3450_v12 = vld [vmem:[%s4506_s1 + $0x1c4] ss:$16 sps:$4 sm:$0xff]  }
  0x30   : > { %1024 = vmatprep.subr.bf16.mxu0 %v3633_v0 }
  0x31   : > { %3215 = vmatpush1.bf16.msra.mxu1 %v3777_v22 }
  0x32   : > { %3204 = vmatprep.subr.bf16.mxu1 %v3633_v0 }
  0x33   : > { %1025 = vmatpush1.bf16.msra.mxu0 %v3373_v14  ;;  %v3456_v14 = vld [vmem:[%s4506_s1 + $0x1e4] ss:$16 sps:$4 sm:$0xff]  }
  0x34   : > { %1026 = vmatprep.subr.bf16.mxu0 %v3633_v0 }
  0x35   : > { %3216 = vmatpush1.bf16.msra.mxu1 %v3784_v24 }
  0x36   : > { %3205 = vmatprep.subr.bf16.mxu1 %v3633_v0 }
  0x37   : > { %1027 = vmatpush1.bf16.msra.mxu0 %v3374_v16  ;;  %v3462_v16 = vld [vmem:[%s4506_s1 + $0x204] ss:$16 sps:$4 sm:$0xff]  }
  0x38   : > { %1028 = vmatprep.subr.bf16.mxu0 %v3633_v0 }
  0x39   : > { %3217 = vmatpush1.bf16.msra.mxu1 %v3791_v26 }
  0x3a   : > { %3206 = vmatprep.subr.bf16.mxu1 %v3633_v0 }
  0x3b   : > { %1029 = vmatpush1.bf16.msra.mxu0 %v3375_v19  ;;  %v3472_v19 = vld [vmem:[%s4506_s1 + $0x220] ss:$16 sps:$4 sm:$0xff]  }
  0x3c   : > { %1030 = vmatprep.subr.bf16.mxu0 %v3633_v0 }
  0x3d   : > { %3218 = vmatpush1.bf16.msra.mxu1 %v3797_v28 }
  0x3e   : > { %3207 = vmatprep.subr.bf16.mxu1 %v3633_v0 }
  0x3f   : > { %1031 = vmatpush1.bf16.msra.mxu0 %v3376_v21  ;;  %v3474_v21 = vld [vmem:[%s4506_s1 + $0x8] ss:$16 sps:$4 sm:$0xff]  }
  0x40   : > { %1032 = vmatprep.subr.bf16.mxu0 %v3633_v0 }
  0x41   : > { %3219 = vmatpush1.bf16.msra.mxu1 %v3805_v30 }
  0x43   : > { %1033 = vmatpush1.bf16.msra.mxu0 %v3377_v23  ;;  %v3479_v23 = vld [vmem:[%s4506_s1 + $0x28] ss:$16 sps:$4 sm:$0xff]  }
  0x44   : > { %1034 = vmatprep.subr.bf16.mxu0 %v3633_v0  ;;  %1290 = vmatmul.mubr.bf16.vlgmr.msra.gmra.mrb[0].mxu1 %v3422_v32  ;;  %v3501_v32 = vld [vmem:[%s4507_s2 + $0x40] ss:$8 sps:$4 sm:$0xff]  }
  0x45   : > { %3020 = vmatprep.mubr.msk.bf16.mxu1 %vm953_vm0, %v3428_v34  ;;  %v3492_v34 = vld [vmem:[%s4506_s1 + $0xcc] ss:$16 sps:$4 sm:$0xff]  }
  0x47   : > { %1035 = vmatpush1.bf16.msra.mxu0 %v3378_v25  ;;  %v3482_v25 = vld [vmem:[%s4506_s1 + $0x48] ss:$16 sps:$4 sm:$0xff]  }
  0x48   : > { %1036 = vmatprep.subr.bf16.mxu0 %v3633_v0 }
  0x4b   : > { %1037 = vmatpush1.bf16.msra.mxu0 %v3379_v27  ;;  %v3485_v27 = vld [vmem:[%s4506_s1 + $0x68] ss:$16 sps:$4 sm:$0xff]  }
  0x4c   : > { %1038 = vmatprep.subr.bf16.mxu0 %v3633_v0  ;;  %1298 = vmatmul.mubr.bf16.gmra.mrb[4].mxu1 %v3431_v36  ;;  %v3495_v36 = vld [vmem:[%s4506_s1 + $0xec] ss:$16 sps:$4 sm:$0xff]  }
  0x4d   : > { %3021 = vmatprep.mubr.msk.bf16.mxu1 %vm953_vm0, %v3434_v38  ;;  %v3498_v38 = vld [vmem:[%s4506_s1 + $0x10c] ss:$16 sps:$4 sm:$0xff]  }
  0x4f   : > { %1039 = vmatpush1.bf16.msra.mxu0 %v3380_v29  ;;  %v3488_v29 = vld [vmem:[%s4506_s1 + $0x88] ss:$16 sps:$4 sm:$0xff]  }
  0x50   : > { %1185 = vmatprep.subr.bf16.mxu0 %v3633_v0 }
  0x52   : > { %1041 = vmatmul.mubr.bf16.vlgmr.msra.gmra.mrb[0].mxu0 %v3381_v31  ;;  %v3491_v31 = vld [vmem:[%s4506_s1 + $0xa8] ss:$16 sps:$4 sm:$0xff]  }
  0x53   : > { %1186 = vmatpush1.bf16.msra.mxu0 %v3726_v7  ;;  %1048 = vmatprep.mubr.bf16.mxu0 %v3385_v33  ;;  %v3436_v7 = vld [vmem:[%s4506_s1 + $0x160] ss:$16 sps:$4 sm:$0xff]   ;;  %v3503_v33 = vld [vmem:[%s4507_s2 + $0x44] ss:$8 sps:$4 sm:$0xff]  }
  0x54   : > { %1187 = vmatprep.subr.bf16.mxu0 %v3633_v0  ;;  %1306 = vmatmul.mubr.bf16.gmra.mrb[8].mxu1 %v3437_v40  ;;  %v3506_v40 = vld [vmem:[%s4507_s2 + $0x54] ss:$8 sps:$4 sm:$0xff]  }
  0x55   : > { %3022 = vmatprep.mubr.msk.bf16.mxu1 %vm953_vm0, %v3440_v42  ;;  %1443 = vmatprep.subr.bf16.mxu1 %v3503_v33 }
  0x56   : > { %1444 = vmatpush1.bf16.msra.mxu1 %v3501_v32 }
  0x57   : > { %1188 = vmatpush1.bf16.msra.mxu0 %v3730_v9  ;;  %v3442_v9 = vld [vmem:[%s4506_s1 + $0x180] ss:$16 sps:$4 sm:$0xff]   ;;  %1445 = vmatprep.subr.bf16.mxu1 %v3506_v40 }
  0x58   : > { %1189 = vmatprep.subr.bf16.mxu0 %v3633_v0 }
  0x5a   : > { %1049 = vmatmul.mubr.bf16.gmra.mrb[4].mxu0 %v3387_v35  ;;  %v3494_v35 = vld [vmem:[%s4506_s1 + $0xc8] ss:$16 sps:$4 sm:$0xff]  }
  0x5b   : > { %1056 = vmatprep.mubr.bf16.mxu0 %v3388_v37  ;;  %1190 = vmatpush1.bf16.msra.mxu0 %v3738_v11  ;;  %v3448_v11 = vld [vmem:[%s4506_s1 + $0x1a0] ss:$16 sps:$4 sm:$0xff]   ;;  %v3497_v37 = vld [vmem:[%s4506_s1 + $0xe8] ss:$16 sps:$4 sm:$0xff]  }
  0x5c   : > { %1191 = vmatprep.subr.bf16.mxu0 %v3633_v0  ;;  %1314 = vmatmul.mubr.bf16.gmra.mrb[12].mxu1 %v3443_v44 }
  0x5d   : > { %3023 = vmatprep.mubr.msk.bf16.mxu1 %vm953_vm0, %v3446_v46  ;;  %v3507_v46 = vld [vmem:[%s4507_s2 + $0x60] ss:$8 sps:$4 sm:$0xff]  }
  0x5f   : > { %1192 = vmatpush1.bf16.msra.mxu0 %v3745_v13  ;;  %v3454_v13 = vld [vmem:[%s4506_s1 + $0x1c0] ss:$16 sps:$4 sm:$0xff]  }
  0x60   : > { %1193 = vmatprep.subr.bf16.mxu0 %v3633_v0 }
  0x62   : > { %1057 = vmatmul.mubr.bf16.gmra.mrb[8].mxu0 %v3390_v39  ;;  %v3504_v39 = vld [vmem:[%s4507_s2 + $0x50] ss:$8 sps:$4 sm:$0xff]  }
  0x63   : > { %1064 = vmatprep.mubr.bf16.mxu0 %v3392_v41  ;;  %1194 = vmatpush1.bf16.msra.mxu0 %v3752_v15  ;;  %v3460_v15 = vld [vmem:[%s4506_s1 + $0x1e0] ss:$16 sps:$4 sm:$0xff]   ;;  %v3500_v41 = vld [vmem:[%s4506_s1 + $0x108] ss:$16 sps:$4 sm:$0xff]  }
  0x64   : > { %1195 = vmatprep.subr.bf16.mxu0 %v3633_v0  ;;  %1322 = vmatmul.mubr.bf16.gmra.mrb[16].mxu1 %v3449_v48 }
  0x65   : > { %3024 = vmatprep.mubr.msk.bf16.mxu1 %vm953_vm0, %v3452_v50  ;;  %1446 = vmatpush1.bf16.msra.mxu1 %v3504_v39 }
  0x67   : > { %1196 = vmatpush1.bf16.msra.mxu0 %v3759_v17  ;;  %v3466_v17 = vld [vmem:[%s4506_s1 + $0x200] ss:$16 sps:$4 sm:$0xff]  }
  0x68   : > { %1197 = vmatprep.subr.bf16.mxu0 %v3633_v0 }
  0x6a   : > { %1065 = vmatmul.mubr.bf16.gmra.mrb[12].mxu0 %v3394_v43 }
  0x6b   : > { %1072 = vmatprep.mubr.bf16.mxu0 %v3396_v45  ;;  %1198 = vmatpush1.bf16.msra.mxu0 %v3770_v20  ;;  %v3476_v20 = vld [vmem:[%s4506_s1 + $0xc] ss:$16 sps:$4 sm:$0xff]  }
  0x6c   : > { %1199 = vmatprep.subr.bf16.mxu0 %v3633_v0  ;;  %1330 = vmatmul.mubr.bf16.gmra.mrb[20].mxu1 %v3455_v52 }
  0x6d   : > { %3025 = vmatprep.mubr.msk.bf16.mxu1 %vm953_vm0, %v3458_v54 }
  0x6f   : > { %1200 = vmatpush1.bf16.msra.mxu0 %v3777_v22  ;;  %v3477_v22 = vld [vmem:[%s4506_s1 + $0x2c] ss:$16 sps:$4 sm:$0xff]  }
  0x70   : > { %1201 = vmatprep.subr.bf16.mxu0 %v3633_v0 }
  0x72   : > { %1073 = vmatmul.mubr.bf16.gmra.mrb[16].mxu0 %v3398_v47  ;;  %v3509_v47 = vld [vmem:[%s4507_s2 + $0x64] ss:$8 sps:$4 sm:$0xff]  }
  0x73   : > { %1080 = vmatprep.mubr.bf16.mxu0 %v3400_v49  ;;  %1202 = vmatpush1.bf16.msra.mxu0 %v3784_v24  ;;  %v3480_v24 = vld [vmem:[%s4506_s1 + $0x4c] ss:$16 sps:$4 sm:$0xff]  }
  0x74   : > { %1203 = vmatprep.subr.bf16.mxu0 %v3633_v0  ;;  %1338 = vmatmul.mubr.bf16.gmra.mrb[24].mxu1 %v3461_v56  ;;  %v3510_v56 = vld [vmem:[%s4507_s2 + $0x70] ss:$8 sps:$4 sm:$0xff]  }
  0x75   : > { %3026 = vmatprep.mubr.msk.bf16.mxu1 %vm953_vm0, %v3464_v58  ;;  %1447 = vmatprep.subr.bf16.mxu1 %v3509_v47 }
  0x76   : > { %1448 = vmatpush1.bf16.msra.mxu1 %v3507_v46 }
  0x77   : > { %1204 = vmatpush1.bf16.msra.mxu0 %v3791_v26  ;;  %v3483_v26 = vld [vmem:[%s4506_s1 + $0x6c] ss:$16 sps:$4 sm:$0xff]  }
  0x78   : > { %1205 = vmatprep.subr.bf16.mxu0 %v3633_v0 }
  0x7a   : > { %1081 = vmatmul.mubr.bf16.gmra.mrb[20].mxu0 %v3402_v51 }
  0x7b   : > { %1088 = vmatprep.mubr.bf16.mxu0 %v3405_v53  ;;  %1206 = vmatpush1.bf16.msra.mxu0 %v3797_v28  ;;  %v3486_v28 = vld [vmem:[%s4506_s1 + $0x8c] ss:$16 sps:$4 sm:$0xff]  }
  0x7c   : > { %1207 = vmatprep.subr.bf16.mxu0 %v3633_v0  ;;  %1346 = vmatmul.mubr.bf16.gmra.mrb[28].mxu1 %v3467_v60 }
  0x7d   : > { %3027 = vmatprep.mubr.msk.bf16.mxu1 %vm953_vm0, %v3470_v62 }
  0x7f   : > { %1208 = vmatpush1.bf16.msra.mxu0 %v3805_v30  ;;  %v3489_v30 = vld [vmem:[%s4506_s1 + $0xac] ss:$16 sps:$4 sm:$0xff]  }
  0x82   : > { %1089 = vmatmul.mubr.bf16.gmra.mrb[24].mxu0 %v3407_v55 }
  0x83   : > { %1096 = vmatprep.mubr.bf16.mxu0 %v3410_v57  ;;  %v3512_v57 = vld [vmem:[%s4507_s2 + $0x74] ss:$8 sps:$4 sm:$0xff]  }
  0x84   : > { %1354 = vmatmul.mubr.bf16.gmra.mrb[32].mxu1 %v3473_v1  ;;  %1449 = vmatprep.subr.bf16.mxu1 %v3512_v57 }
  0x85   : > { %1475 = vmatprep.mubr.bf16.mxu1 %v3633_v0  ;;  %1450 = vmatpush1.bf16.msra.mxu1 %v3510_v56 }
  0x8a   : > { %1097 = vmatmul.mubr.bf16.gmra.mrb[28].mxu0 %v3412_v59 }
  0x8b   : > { %1104 = vmatprep.mubr.bf16.mxu0 %v3415_v61 }
  0x92   : > { %1105 = vmatmul.mubr.bf16.gmra.mrb[32].mxu0 %v3417_v63 }
  0x93   : > { %1112 = vmatprep.mubr.bf16.mxu0 %v3420_v2 }
  0x9a   : > { %1113 = vmatmul.mubr.bf16.gmra.mrb[36].mxu0 %v3425_v3  ;;  %v3515_v3 = vld [vmem:[%s4507_s2 + $0x4] ss:$8 sps:$4 sm:$0xff]  }
  0x9b   : > { %1120 = vmatprep.mubr.bf16.mxu0 %v3426_v4  ;;  %1542 = vmatprep.subr.bf16.mxu1 %v3515_v3 }
  0xa2   : > { %1121 = vmatmul.mubr.bf16.gmra.mrb[40].mxu0 %v3430_v5 }
  0xa3   : > { %1128 = vmatprep.mubr.bf16.mxu0 %v3432_v6 }
  0xaa   : > { %1129 = vmatmul.mubr.bf16.gmra.mrb[44].mxu0 %v3436_v7 }
  0xab   : > { %1136 = vmatprep.mubr.bf16.mxu0 %v3438_v8 }
  0xb2   : > { %1137 = vmatmul.mubr.bf16.gmra.mrb[48].mxu0 %v3442_v9 }
  0xb3   : > { %1144 = vmatprep.mubr.bf16.mxu0 %v3444_v10 }
  0xba   : > { %1145 = vmatmul.mubr.bf16.gmra.mrb[52].mxu0 %v3448_v11 }
  0xbb   : > { %1152 = vmatprep.mubr.bf16.mxu0 %v3450_v12 }
  0xc2   : > { %1153 = vmatmul.mubr.bf16.gmra.mrb[56].mxu0 %v3454_v13 }
  0xc3   : > { %1160 = vmatprep.mubr.bf16.mxu0 %v3456_v14 }
  0xca   : > { %1161 = vmatmul.mubr.bf16.gmra.mrb[60].mxu0 %v3460_v15 }
  0xcb   : > { %1168 = vmatprep.mubr.bf16.mxu0 %v3462_v16 }
  0xd2   : > { %1169 = vmatmul.mubr.bf16.gmra.mrb[64].mxu0 %v3466_v17 }
  0xd3   : > { %1176 = vmatprep.mubr.bf16.mxu0 %v3468_v18 }
  0xda   : > { %1177 = vmatmul.mubr.bf16.gmra.mrb[68].mxu0 %v3472_v19 }
  0xdb   : > { %3010 = vmatprep.mubr.msk.bf16.mxu0 %vm953_vm0, %v3476_v20 }
  0xe2   : > { %1218 = vmatmul.mubr.bf16.vlgmr.msra.gmra.mrb[0].mxu0 %v3474_v21 }
  0xe3   : > { %3011 = vmatprep.mubr.msk.bf16.mxu0 %vm953_vm0, %v3477_v22 }
  0xea   : > { %1226 = vmatmul.mubr.bf16.gmra.mrb[4].mxu0 %v3479_v23 }
  0xeb   : > { %3012 = vmatprep.mubr.msk.bf16.mxu0 %vm953_vm0, %v3480_v24 }
  0xf2   : > { %1234 = vmatmul.mubr.bf16.gmra.mrb[8].mxu0 %v3482_v25 }
  0xf3   : > { %3013 = vmatprep.mubr.msk.bf16.mxu0 %vm953_vm0, %v3483_v26 }
  0xfa   : > { %1242 = vmatmul.mubr.bf16.gmra.mrb[12].mxu0 %v3485_v27 }
  0xfb   : > { %3014 = vmatprep.mubr.msk.bf16.mxu0 %vm953_vm0, %v3486_v28 }
 0x102   : > { %1250 = vmatmul.mubr.bf16.gmra.mrb[16].mxu0 %v3488_v29 }
 0x103   : > { %3015 = vmatprep.mubr.msk.bf16.mxu0 %vm953_vm0, %v3489_v30 }
 0x10a   : > { %1258 = vmatmul.mubr.bf16.gmra.mrb[20].mxu0 %v3491_v31 }
 0x10b   : > { %3016 = vmatprep.mubr.msk.bf16.mxu0 %vm953_vm0, %v3492_v34 }
 0x112   : > { %1266 = vmatmul.mubr.bf16.gmra.mrb[24].mxu0 %v3494_v35 }
 0x113   : > { %3017 = vmatprep.mubr.msk.bf16.mxu0 %vm953_vm0, %v3495_v36 }
 0x117   : > { %v1291_v42 = vpop.f32.mrb[0].mxu1 }
 0x118   : > { %v1293_v43 = vpop.f32.mrb[1].mxu1 }
 0x119   : > { %v1294_v44 = vpop.f32.mrb[2].mxu1 }
 0x11a   : > { %1274 = vmatmul.mubr.bf16.gmra.mrb[28].mxu0 %v3497_v37  ;;  %v1296_v45 = vpop.f32.mrb[3].mxu1 }
 0x11b   : > { %3018 = vmatprep.mubr.msk.bf16.mxu0 %vm953_vm0, %v3498_v38 }
 0x11f   : > { %v1299_v48 = vpop.f32.mrb[4].mxu1 }
 0x120   : > { %v1301_v49 = vpop.f32.mrb[5].mxu1 }
 0x121   : > { %v1302_v50 = vpop.f32.mrb[6].mxu1 }
 0x122   : > { %1282 = vmatmul.mubr.bf16.gmra.mrb[32].mxu0 %v3500_v41  ;;  %v1304_v51 = vpop.f32.mrb[7].mxu1 }
 0x127   : > { %v1307_v52 = vpop.f32.mrb[8].mxu1 }
 0x128   : > { %v1309_v53 = vpop.f32.mrb[9].mxu1 }
 0x129   : > { %v1310_v54 = vpop.f32.mrb[10].mxu1 }
 0x12a   : > { %v1312_v55 = vpop.f32.mrb[11].mxu1 }
 0x12f   : > { %v1315_v58 = vpop.f32.mrb[12].mxu1 }
 0x130   : > { %v1317_v59 = vpop.f32.mrb[13].mxu1 }
 0x131   : > { %v1318_v60 = vpop.f32.mrb[14].mxu1 }
 0x132   : > { %v1320_v61 = vpop.f32.mrb[15].mxu1 }
 0x137   : > { %v1323_v62 = vpop.f32.mrb[16].mxu1 }
 0x138   : > { %v1325_v63 = vpop.f32.mrb[17].mxu1 }
 0x139   : > { %v1326_v1 = vpop.f32.mrb[18].mxu1 }
 0x13a   : > { %v1328_v2 = vpop.f32.mrb[19].mxu1 }
 0x13f   : > { %v1331_v4 = vpop.f32.mrb[20].mxu1 }
 0x140   : > { %v1333_v5 = vpop.f32.mrb[21].mxu1 }
 0x141   : > { %v1334_v6 = vpop.f32.mrb[22].mxu1 }
 0x142   : > { %v1336_v7 = vpop.f32.mrb[23].mxu1 }
 0x147   : > { %v1339_v8 = vpop.f32.mrb[24].mxu1 }
 0x148   : > { %v1341_v9 = vpop.f32.mrb[25].mxu1 }
 0x149   : > { %v1342_v10 = vpop.f32.mrb[26].mxu1 }
 0x14a   : > { %v1344_v11 = vpop.f32.mrb[27].mxu1 }
 0x14f   : > { %v1347_v12 = vpop.f32.mrb[28].mxu1 }
 0x150   : > { %v1349_v13 = vpop.f32.mrb[29].mxu1 }
 0x151   : > { %v1350_v14 = vpop.f32.mrb[30].mxu1 }
 0x152   : > { %v1352_v15 = vpop.f32.mrb[31].mxu1 }
 0x157   : > { %v1355_v16 = vpop.f32.mrb[32].mxu1 }
 0x158   : > { %v1357_v17 = vpop.f32.mrb[33].mxu1 }
 0x159   : > { %v1358_v18 = vpop.f32.mrb[34].mxu1 }
 0x15a   : > { %v1360_v19 = vpop.f32.mrb[35].mxu1 }
 0x16d   : > { %v1114_v20 = vpop.f32.mrb[36].mxu0 }
 0x16e   : > { %v4089_v21 = vadd.f32 %v1291_v42, %v1114_v20  ;;  %v1116_v22 = vpop.f32.mrb[37].mxu0 }
 0x16f   : > { %v1117_v23 = vpop.f32.mrb[38].mxu0 }
 0x170   : > { %v4091_v24 = vadd.f32 %v1294_v44, %v1117_v23  ;;  %v1119_v25 = vpop.f32.mrb[39].mxu0 }
 0x172   : > { %v1371_v26 = vpack.c.bf16 %v4091_v24, %v4089_v21  ;;  %v3578_v21 = vld [vmem:[%s4507_s2 + $0x194] ss:$8 sps:$4 sm:$0xff]   ;;  %v3576_v24 = vld [vmem:[%s4507_s2 + $0x190] ss:$8 sps:$4 sm:$0xff]  }
 0x175   : > { %v1122_v27 = vpop.f32.mrb[40].mxu0 }
 0x176   : > { %v4095_v28 = vadd.f32 %v1299_v48, %v1122_v27  ;;  %v1124_v29 = vpop.f32.mrb[41].mxu0 }
 0x177   : > { %v1125_v30 = vpop.f32.mrb[42].mxu0 }
 0x178   : > { %v4097_v31 = vadd.f32 %v1302_v50, %v1125_v30  ;;  %v1127_v32 = vpop.f32.mrb[43].mxu0 }
 0x17a   : > { %v1372_v33 = vpack.c.bf16 %v4097_v31, %v4095_v28  ;;  %v3584_v28 = vld [vmem:[%s4507_s2 + $0x1b4] ss:$8 sps:$4 sm:$0xff]   ;;  %v3582_v31 = vld [vmem:[%s4507_s2 + $0x1b0] ss:$8 sps:$4 sm:$0xff]  }
 0x17d   : > { %v1130_v34 = vpop.f32.mrb[44].mxu0 }
 0x17e   : > { %v4101_v35 = vadd.f32 %v1307_v52, %v1130_v34  ;;  %v1132_v36 = vpop.f32.mrb[45].mxu0 }
 0x17f   : > { %v1133_v37 = vpop.f32.mrb[46].mxu0 }
 0x180   : > { %v4103_v38 = vadd.f32 %v1310_v54, %v1133_v37  ;;  %v1135_v39 = vpop.f32.mrb[47].mxu0 }
 0x182   : > { %v1373_v40 = vpack.c.bf16 %v4103_v38, %v4101_v35  ;;  %v3590_v35 = vld [vmem:[%s4507_s2 + $0x1d4] ss:$8 sps:$4 sm:$0xff]   ;;  %v3588_v38 = vld [vmem:[%s4507_s2 + $0x1d0] ss:$8 sps:$4 sm:$0xff]  }
 0x185   : > { %v1138_v41 = vpop.f32.mrb[48].mxu0 }
 0x186   : > { %v4107_v42 = vadd.f32 %v1315_v58, %v1138_v41  ;;  %v1140_v43 = vpop.f32.mrb[49].mxu0 }
 0x187   : > { %v1141_v44 = vpop.f32.mrb[50].mxu0 }
 0x188   : > { %v4109_v45 = vadd.f32 %v1318_v60, %v1141_v44  ;;  %v1143_v46 = vpop.f32.mrb[51].mxu0 }
 0x18a   : > { %v1374_v47 = vpack.c.bf16 %v4109_v45, %v4107_v42  ;;  %v3596_v42 = vld [vmem:[%s4507_s2 + $0x1f4] ss:$8 sps:$4 sm:$0xff]   ;;  %v3594_v45 = vld [vmem:[%s4507_s2 + $0x1f0] ss:$8 sps:$4 sm:$0xff]  }
 0x18d   : > { %v1146_v48 = vpop.f32.mrb[52].mxu0 }
 0x18e   : > { %v4113_v49 = vadd.f32 %v1323_v62, %v1146_v48  ;;  %v1148_v50 = vpop.f32.mrb[53].mxu0  ;;  %v3518_v48 = vld [vmem:[%s4507_s2 + $0x14] ss:$8 sps:$4 sm:$0xff]  }
 0x18f   : > { %v1149_v51 = vpop.f32.mrb[54].mxu0  ;;  %v3516_v50 = vld [vmem:[%s4507_s2 + $0x10] ss:$8 sps:$4 sm:$0xff]  }
 0x190   : > { %v4115_v52 = vadd.f32 %v1326_v1, %v1149_v51  ;;  %v1151_v53 = vpop.f32.mrb[55].mxu0  ;;  %v3521_v51 = vld [vmem:[%s4507_s2 + $0x24] ss:$8 sps:$4 sm:$0xff]  }
 0x192   : > { %v1375_v54 = vpack.c.bf16 %v4115_v52, %v4113_v49  ;;  %v3602_v49 = vld [vmem:[%s4507_s2 + $0x214] ss:$8 sps:$4 sm:$0xff]   ;;  %v3600_v52 = vld [vmem:[%s4507_s2 + $0x210] ss:$8 sps:$4 sm:$0xff]  }
 0x195   : > { %v1154_v55 = vpop.f32.mrb[56].mxu0 }
 0x196   : > { %v4119_v56 = vadd.f32 %v1331_v4, %v1154_v55  ;;  %v1156_v57 = vpop.f32.mrb[57].mxu0 }
 0x197   : > { %v1157_v58 = vpop.f32.mrb[58].mxu0 }
 0x198   : > { %v4121_v59 = vadd.f32 %v1334_v6, %v1157_v58  ;;  %v1159_v60 = vpop.f32.mrb[59].mxu0  ;;  %v3519_v58 = vld [vmem:[%s4507_s2 + $0x20] ss:$8 sps:$4 sm:$0xff]  }
 0x19a   : > { %v1376_v61 = vpack.c.bf16 %v4121_v59, %v4119_v56  ;;  %v3608_v56 = vld [vmem:[%s4507_s2 + $0x234] ss:$8 sps:$4 sm:$0xff]   ;;  %v3606_v59 = vld [vmem:[%s4507_s2 + $0x230] ss:$8 sps:$4 sm:$0xff]  }
 0x19d   : > { %v1162_v62 = vpop.f32.mrb[60].mxu0 }
 0x19e   : > { %v4125_v63 = vadd.f32 %v1339_v8, %v1162_v62  ;;  %v1164_v1 = vpop.f32.mrb[61].mxu0 }
 0x19f   : > { %v1165_v2 = vpop.f32.mrb[62].mxu0  ;;  %v3524_v1 = vld [vmem:[%s4507_s2 + $0x34] ss:$8 sps:$4 sm:$0xff]  }
 0x1a0   : > { %v4127_v3 = vadd.f32 %v1342_v10, %v1165_v2  ;;  %v1167_v5 = vpop.f32.mrb[63].mxu0  ;;  %v3522_v2 = vld [vmem:[%s4507_s2 + $0x30] ss:$8 sps:$4 sm:$0xff]  }
 0x1a1   : > { %v3527_v5 = vld [vmem:[%s4507_s2 + $0x84] ss:$8 sps:$4 sm:$0xff]  }
 0x1a2   : > { %v1377_v4 = vpack.c.bf16 %v4127_v3, %v4125_v63 }
 0x1a5   : > { %v1170_v7 = vpop.f32.mrb[64].mxu0 }
 0x1a6   : > { %v4131_v9 = vadd.f32 %v1347_v12, %v1170_v7  ;;  %v1172_v6 = vpop.f32.mrb[65].mxu0 }
 0x1a7   : > { %v1173_v11 = vpop.f32.mrb[66].mxu0 }
 0x1a8   : > { %v4133_v13 = vadd.f32 %v1350_v14, %v1173_v11  ;;  %v1175_v15 = vpop.f32.mrb[67].mxu0 }
 0x1a9   : > { %v3525_v15 = vld [vmem:[%s4507_s2 + $0x80] ss:$8 sps:$4 sm:$0xff]  }
 0x1aa   : > { %v1378_v8 = vpack.c.bf16 %v4133_v13, %v4131_v9 }
 0x1ad   : > { %v1178_v17 = vpop.f32.mrb[68].mxu0 }
 0x1ae   : > { %v4137_v19 = vadd.f32 %v1355_v16, %v1178_v17  ;;  %v1180_v10 = vpop.f32.mrb[69].mxu0 }
 0x1af   : > { %v1181_v20 = vpop.f32.mrb[70].mxu0 }
 0x1b0   : > { %v4139_v22 = vadd.f32 %v1358_v18, %v1181_v20  ;;  %v1183_v23 = vpop.f32.mrb[71].mxu0  ;;  %v3513_v18 = vld [vmem:[%s4507_s2] ss:$8 sps:$4 sm:$0xff]   ;;  %v3530_v20 = vld [vmem:[%s4507_s2 + $0x94] ss:$8 sps:$4 sm:$0xff]  }
 0x1b1   : > { %v3528_v23 = vld [vmem:[%s4507_s2 + $0x90] ss:$8 sps:$4 sm:$0xff]  }
 0x1b2   : > { %v1379_v12 = vpack.c.bf16 %v4139_v22, %v4137_v19 }
 0x1b5   : > { %v1219_v25 = vpop.f32.mrb[0].mxu0 }
 0x1b6   : > { %v1221_v27 = vpop.f32.mrb[1].mxu0 }
 0x1b7   : > { %v1222_v29 = vpop.f32.mrb[2].mxu0 }
 0x1b8   : > { %v1362_v14 = vpack.c.bf16 %v1222_v29, %v1219_v25  ;;  %v1224_v30 = vpop.f32.mrb[3].mxu0  ;;  %v3533_v25 = vld [vmem:[%s4507_s2 + $0xa4] ss:$8 sps:$4 sm:$0xff]  }
 0x1bd   : > { %v1227_v32 = vpop.f32.mrb[4].mxu0 }
 0x1be   : > { %v1229_v34 = vpop.f32.mrb[5].mxu0 }
 0x1bf   : > { %v1230_v36 = vpop.f32.mrb[6].mxu0 }
 0x1c0   : > { %v1363_v37 = vpack.c.bf16 %v1230_v36, %v1227_v32  ;;  %v1232_v39 = vpop.f32.mrb[7].mxu0  ;;  %v3536_v36 = vld [vmem:[%s4507_s2 + $0xb4] ss:$8 sps:$4 sm:$0xff]  }
 0x1c1   : > { %v3534_v39 = vld [vmem:[%s4507_s2 + $0xb0] ss:$8 sps:$4 sm:$0xff]  }
 0x1c5   : > { %v1235_v16 = vpop.f32.mrb[8].mxu0 }
 0x1c6   : > { %v1237_v41 = vpop.f32.mrb[9].mxu0 }
 0x1c7   : > { %v1238_v43 = vpop.f32.mrb[10].mxu0 }
 0x1c8   : > { %v1364_v44 = vpack.c.bf16 %v1238_v43, %v1235_v16  ;;  %v1240_v46 = vpop.f32.mrb[11].mxu0  ;;  %v3539_v16 = vld [vmem:[%s4507_s2 + $0xc4] ss:$8 sps:$4 sm:$0xff]  }
 0x1ca   : > { %3044 = vmatmul.mubr.msk.bf16.vlgmr.msra.gmra.mrb[36].mxu1 %vm953_vm0, %v1364_v44 }
 0x1cb   : > { %1543 = vmatpush1.bf16.msra.mxu1 %v3513_v18  ;;  %1485 = vmatprep.mubr.bf16.mxu1 %v3633_v0 }
 0x1cc   : > { %1544 = vmatprep.subr.bf16.mxu1 %v3518_v48  ;;  %v3542_v48 = vld [vmem:[%s4507_s2 + $0xd4] ss:$8 sps:$4 sm:$0xff]  }
 0x1cd   : > { %v1243_v53 = vpop.f32.mrb[12].mxu0 }
 0x1ce   : > { %v1245_v55 = vpop.f32.mrb[13].mxu0 }
 0x1cf   : > { %v1246_v57 = vpop.f32.mrb[14].mxu0  ;;  %1545 = vmatpush1.bf16.msra.mxu1 %v3516_v50  ;;  %v3540_v50 = vld [vmem:[%s4507_s2 + $0xd0] ss:$8 sps:$4 sm:$0xff]  }
 0x1d0   : > { %v1365_v60 = vpack.c.bf16 %v1246_v57, %v1243_v53  ;;  %v1248_v62 = vpop.f32.mrb[15].mxu0  ;;  %1546 = vmatprep.subr.bf16.mxu1 %v3521_v51  ;;  %v3545_v51 = vld [vmem:[%s4507_s2 + $0xe4] ss:$8 sps:$4 sm:$0xff]  }
 0x1d2   : > { %3045 = vmatmul.mubr.msk.bf16.gmra.mrb[40].mxu1 %vm953_vm0, %v1365_v60 }
 0x1d3   : > { %1547 = vmatpush1.bf16.msra.mxu1 %v3519_v58  ;;  %1574 = vmatprep.mubr.bf16.mxu1 %v3633_v0  ;;  %v3543_v58 = vld [vmem:[%s4507_s2 + $0xe0] ss:$8 sps:$4 sm:$0xff]  }
 0x1d4   : > { %1548 = vmatprep.subr.bf16.mxu1 %v3524_v1  ;;  %v3548_v1 = vld [vmem:[%s4507_s2 + $0xf4] ss:$8 sps:$4 sm:$0xff]  }
 0x1d5   : > { %v1251_v7 = vpop.f32.mrb[16].mxu0 }
 0x1d6   : > { %v1253_v6 = vpop.f32.mrb[17].mxu0 }
 0x1d7   : > { %v1254_v11 = vpop.f32.mrb[18].mxu0  ;;  %1549 = vmatpush1.bf16.msra.mxu1 %v3522_v2  ;;  %v3546_v2 = vld [vmem:[%s4507_s2 + $0xf0] ss:$8 sps:$4 sm:$0xff]  }
 0x1d8   : > { %v1366_v17 = vpack.c.bf16 %v1254_v11, %v1251_v7  ;;  %v1256_v10 = vpop.f32.mrb[19].mxu0  ;;  %1650 = vmatprep.subr.bf16.mxu1 %v3527_v5  ;;  %v3551_v5 = vld [vmem:[%s4507_s2 + $0x104] ss:$8 sps:$4 sm:$0xff]  }
 0x1da   : > { %3054 = vmatmul.mubr.msk.bf16.vlgmr.msra.gmra.mrb[36].mxu1 %vm953_vm0, %v1362_v14  ;;  %v3531_v14 = vld [vmem:[%s4507_s2 + $0xa0] ss:$8 sps:$4 sm:$0xff]  }
 0x1db   : > { %1651 = vmatpush1.bf16.msra.mxu1 %v3525_v15  ;;  %1584 = vmatprep.mubr.bf16.mxu1 %v3633_v0  ;;  %v3549_v15 = vld [vmem:[%s4507_s2 + $0x100] ss:$8 sps:$4 sm:$0xff]  }
 0x1dc   : > { %1652 = vmatprep.subr.bf16.mxu1 %v3530_v20  ;;  %v3554_v20 = vld [vmem:[%s4507_s2 + $0x114] ss:$8 sps:$4 sm:$0xff]  }
 0x1dd   : > { %v1259_v27 = vpop.f32.mrb[20].mxu0 }
 0x1de   : > { %v1261_v29 = vpop.f32.mrb[21].mxu0 }
 0x1df   : > { %v1262_v30 = vpop.f32.mrb[22].mxu0  ;;  %1653 = vmatpush1.bf16.msra.mxu1 %v3528_v23  ;;  %v3552_v23 = vld [vmem:[%s4507_s2 + $0x110] ss:$8 sps:$4 sm:$0xff]   ;;  %v3560_v29 = vld [vmem:[%s4507_s2 + $0x134] ss:$8 sps:$4 sm:$0xff]  }
 0x1e0   : > { %v1367_v32 = vpack.c.bf16 %v1262_v30, %v1259_v27  ;;  %v1264_v34 = vpop.f32.mrb[23].mxu0  ;;  %1654 = vmatprep.subr.bf16.mxu1 %v3533_v25  ;;  %v3557_v25 = vld [vmem:[%s4507_s2 + $0x124] ss:$8 sps:$4 sm:$0xff]   ;;  %v3555_v27 = vld [vmem:[%s4507_s2 + $0x120] ss:$8 sps:$4 sm:$0xff]  }
 0x1e1   : > { %v3558_v30 = vld [vmem:[%s4507_s2 + $0x130] ss:$8 sps:$4 sm:$0xff]   ;;  %v3566_v34 = vld [vmem:[%s4507_s2 + $0x154] ss:$8 sps:$4 sm:$0xff]  }
 0x1e2   : > { %3055 = vmatmul.mubr.msk.bf16.gmra.mrb[40].mxu1 %vm953_vm0, %v1363_v37  ;;  %v3537_v37 = vld [vmem:[%s4507_s2 + $0xc0] ss:$8 sps:$4 sm:$0xff]  }
 0x1e3   : > { %1655 = vmatpush1.bf16.msra.mxu1 %v3531_v14  ;;  %1682 = vmatprep.mubr.bf16.mxu1 %v3633_v0  ;;  %v3563_v14 = vld [vmem:[%s4507_s2 + $0x144] ss:$8 sps:$4 sm:$0xff]  }
 0x1e4   : > { %1656 = vmatprep.subr.bf16.mxu1 %v3536_v36  ;;  %v3564_v36 = vld [vmem:[%s4507_s2 + $0x150] ss:$8 sps:$4 sm:$0xff]  }
 0x1e5   : > { %v1267_v41 = vpop.f32.mrb[24].mxu0 }
 0x1e6   : > { %v1269_v43 = vpop.f32.mrb[25].mxu0 }
 0x1e7   : > { %v1270_v18 = vpop.f32.mrb[26].mxu0  ;;  %1657 = vmatpush1.bf16.msra.mxu1 %v3534_v39  ;;  %v3569_v39 = vld [vmem:[%s4507_s2 + $0x164] ss:$8 sps:$4 sm:$0xff]   ;;  %v3570_v43 = vld [vmem:[%s4507_s2 + $0x170] ss:$8 sps:$4 sm:$0xff]  }
 0x1e8   : > { %v1368_v44 = vpack.c.bf16 %v1270_v18, %v1267_v41  ;;  %v1272_v46 = vpop.f32.mrb[27].mxu0  ;;  %1766 = vmatprep.subr.bf16.mxu1 %v3539_v16  ;;  %v3567_v16 = vld [vmem:[%s4507_s2 + $0x160] ss:$8 sps:$4 sm:$0xff]   ;;  %v3572_v41 = vld [vmem:[%s4507_s2 + $0x174] ss:$8 sps:$4 sm:$0xff]  }
 0x1e9   : > { %v3575_v18 = vld [vmem:[%s4507_s2 + $0x184] ss:$8 sps:$4 sm:$0xff]   ;;  %v3585_v46 = vld [vmem:[%s4507_s2 + $0x1c0] ss:$8 sps:$4 sm:$0xff]  }
 0x1ea   : > { %3072 = vmatmul.mubr.msk.bf16.vlgmr.msra.gmra.mrb[36].mxu1 %vm953_vm0, %v1366_v17 }
 0x1eb   : > { %1767 = vmatpush1.bf16.msra.mxu1 %v3537_v37  ;;  %1692 = vmatprep.mubr.bf16.mxu1 %v3633_v0  ;;  %v3573_v37 = vld [vmem:[%s4507_s2 + $0x180] ss:$8 sps:$4 sm:$0xff]  }
 0x1ec   : > { %1768 = vmatprep.subr.bf16.mxu1 %v3542_v48  ;;  %v3591_v48 = vld [vmem:[%s4507_s2 + $0x1e0] ss:$8 sps:$4 sm:$0xff]  }
 0x1ed   : > { %v1275_v53 = vpop.f32.mrb[28].mxu0 }
 0x1ee   : > { %v1277_v55 = vpop.f32.mrb[29].mxu0 }
 0x1ef   : > { %v1278_v57 = vpop.f32.mrb[30].mxu0  ;;  %1769 = vmatpush1.bf16.msra.mxu1 %v3540_v50  ;;  %v3597_v50 = vld [vmem:[%s4507_s2 + $0x200] ss:$8 sps:$4 sm:$0xff]  }
 0x1f0   : > { %v1369_v60 = vpack.c.bf16 %v1278_v57, %v1275_v53  ;;  %v1280_v62 = vpop.f32.mrb[31].mxu0  ;;  %1770 = vmatprep.subr.bf16.mxu1 %v3545_v51  ;;  %v3603_v51 = vld [vmem:[%s4507_s2 + $0x220] ss:$8 sps:$4 sm:$0xff]  }
 0x1f2   : > { %3073 = vmatmul.mubr.msk.bf16.gmra.mrb[40].mxu1 %vm953_vm0, %v1367_v32  ;;  %v3561_v32 = vld [vmem:[%s4507_s2 + $0x140] ss:$8 sps:$4 sm:$0xff]  }
 0x1f3   : > { %1771 = vmatpush1.bf16.msra.mxu1 %v3543_v58  ;;  %1798 = vmatprep.mubr.bf16.mxu1 %v3633_v0 }
 0x1f4   : > { %1772 = vmatprep.subr.bf16.mxu1 %v3548_v1 }
 0x1f5   : > { %v1283_v7 = vpop.f32.mrb[32].mxu0 }
 0x1f6   : > { %v1285_v6 = vpop.f32.mrb[33].mxu0 }
 0x1f7   : > { %v1286_v11 = vpop.f32.mrb[34].mxu0  ;;  %1773 = vmatpush1.bf16.msra.mxu1 %v3546_v2 }
 0x1f8   : > { %v1370_v17 = vpack.c.bf16 %v1286_v11, %v1283_v7  ;;  %v1288_v10 = vpop.f32.mrb[35].mxu0  ;;  %1882 = vmatprep.subr.bf16.mxu1 %v3551_v5 }
 0x1fa   : > { %3090 = vmatmul.mubr.msk.bf16.vlgmr.msra.gmra.mrb[36].mxu1 %vm953_vm0, %v1368_v44  ;;  %v3579_v44 = vld [vmem:[%s4507_s2 + $0x1a0] ss:$8 sps:$4 sm:$0xff]  }
 0x1fb   : > { %1883 = vmatpush1.bf16.msra.mxu1 %v3549_v15  ;;  %1808 = vmatprep.mubr.bf16.mxu1 %v3633_v0 }
 0x1fc   : > { %1884 = vmatprep.subr.bf16.mxu1 %v3554_v20 }
 0x1ff   : > { %1885 = vmatpush1.bf16.msra.mxu1 %v3552_v23 }
 0x200   : > { %1886 = vmatprep.subr.bf16.mxu1 %v3557_v25 }
 0x202   : > { %3091 = vmatmul.mubr.msk.bf16.gmra.mrb[40].mxu1 %vm953_vm0, %v1369_v60 }
 0x203   : > { %1887 = vmatpush1.bf16.msra.mxu1 %v3555_v27  ;;  %1914 = vmatprep.mubr.bf16.mxu1 %v3633_v0 }
 0x204   : > { %1888 = vmatprep.subr.bf16.mxu1 %v3560_v29 }
 0x207   : > { %1889 = vmatpush1.bf16.msra.mxu1 %v3558_v30 }
 0x208   : > { %1998 = vmatprep.subr.bf16.mxu1 %v3563_v14 }
 0x20a   : > { %3108 = vmatmul.mubr.msk.bf16.vlgmr.msra.gmra.mrb[36].mxu1 %vm953_vm0, %v1370_v17 }
 0x20b   : > { %1999 = vmatpush1.bf16.msra.mxu1 %v3561_v32  ;;  %1924 = vmatprep.mubr.bf16.mxu1 %v3633_v0 }
 0x20c   : > { %2000 = vmatprep.subr.bf16.mxu1 %v3566_v34  ;;  %v2473_v34 = vld [vmem:[%s4508_s3 + $0x8] sm:$0xff] }
 0x20f   : > { %2001 = vmatpush1.bf16.msra.mxu1 %v3564_v36  ;;  %v2472_v36 = vld [vmem:[%s4508_s3] sm:$0xff] }
 0x210   : > { %2002 = vmatprep.subr.bf16.mxu1 %v3569_v39  ;;  %v3634_v39 = vmov 1  }
 0x212   : > { %3109 = vmatmul.mubr.msk.bf16.gmra.mrb[40].mxu1 %vm953_vm0, %v1371_v26  ;;  %v3581_v26 = vld [vmem:[%s4507_s2 + $0x1a4] ss:$8 sps:$4 sm:$0xff]  }
 0x213   : > { %2003 = vmatpush1.bf16.msra.mxu1 %v3567_v16  ;;  %2030 = vmatprep.mubr.bf16.mxu1 %v3633_v0  ;;  %v2474_v16 = vld [vmem:[%s4508_s3 + $0x10] sm:$0xff] }
 0x214   : > { %2004 = vmatprep.subr.bf16.mxu1 %v3572_v41  ;;  %v2475_v41 = vld [vmem:[%s4508_s3 + $0x18] sm:$0xff] }
 0x217   : > { %2005 = vmatpush1.bf16.msra.mxu1 %v3570_v43 }
 0x218   : > { %2114 = vmatprep.subr.bf16.mxu1 %v3575_v18 }
 0x21a   : > { %3126 = vmatmul.mubr.msk.bf16.vlgmr.msra.gmra.mrb[36].mxu1 %vm953_vm0, %v1372_v33  ;;  %v3587_v33 = vld [vmem:[%s4507_s2 + $0x1c4] ss:$8 sps:$4 sm:$0xff]  }
 0x21b   : > { %2115 = vmatpush1.bf16.msra.mxu1 %v3573_v37  ;;  %2040 = vmatprep.mubr.bf16.mxu1 %v3633_v0 }
 0x21c   : > { %2116 = vmatprep.subr.bf16.mxu1 %v3578_v21 }
 0x21f   : > { %2117 = vmatpush1.bf16.msra.mxu1 %v3576_v24 }
 0x220   : > { %2118 = vmatprep.subr.bf16.mxu1 %v3581_v26 }
 0x222   : > { %3127 = vmatmul.mubr.msk.bf16.gmra.mrb[40].mxu1 %vm953_vm0, %v1373_v40  ;;  %v3593_v40 = vld [vmem:[%s4507_s2 + $0x1e4] ss:$8 sps:$4 sm:$0xff]  }
 0x223   : > { %2119 = vmatpush1.bf16.msra.mxu1 %v3579_v44  ;;  %2146 = vmatprep.mubr.bf16.mxu1 %v3633_v0 }
 0x224   : > { %2120 = vmatprep.subr.bf16.mxu1 %v3584_v28  ;;  %v3635_v28 = vmov 0.0  }
 0x227   : > { %2121 = vmatpush1.bf16.msra.mxu1 %v3582_v31 }
 0x228   : > { %2230 = vmatprep.subr.bf16.mxu1 %v3587_v33 }
 0x22a   : > { %3144 = vmatmul.mubr.msk.bf16.vlgmr.msra.gmra.mrb[36].mxu1 %vm953_vm0, %v1374_v47  ;;  %v3599_v47 = vld [vmem:[%s4507_s2 + $0x204] ss:$8 sps:$4 sm:$0xff]  }
 0x22b   : > { %2231 = vmatpush1.bf16.msra.mxu1 %v3585_v46  ;;  %2156 = vmatprep.mubr.bf16.mxu1 %v3633_v0 }
 0x22c   : > { %2232 = vmatprep.subr.bf16.mxu1 %v3590_v35 }
 0x22f   : > { %2233 = vmatpush1.bf16.msra.mxu1 %v3588_v38 }
 0x230   : > { %2234 = vmatprep.subr.bf16.mxu1 %v3593_v40 }
 0x232   : > { %3145 = vmatmul.mubr.msk.bf16.gmra.mrb[40].mxu1 %vm953_vm0, %v1375_v54  ;;  %v3605_v54 = vld [vmem:[%s4507_s2 + $0x224] ss:$8 sps:$4 sm:$0xff]  }
 0x233   : > { %2235 = vmatpush1.bf16.msra.mxu1 %v3591_v48  ;;  %2262 = vmatprep.mubr.bf16.mxu1 %v3633_v0 }
 0x234   : > { %2236 = vmatprep.subr.bf16.mxu1 %v3596_v42 }
 0x237   : > { %2237 = vmatpush1.bf16.msra.mxu1 %v3594_v45 }
 0x238   : > { %2346 = vmatprep.subr.bf16.mxu1 %v3599_v47 }
 0x23a   : > { %3162 = vmatmul.mubr.msk.bf16.vlgmr.msra.gmra.mrb[36].mxu1 %vm953_vm0, %v1376_v61 }
 0x23b   : > { %2347 = vmatpush1.bf16.msra.mxu1 %v3597_v50  ;;  %2272 = vmatprep.mubr.bf16.mxu1 %v3633_v0 }
 0x23c   : > { %2348 = vmatprep.subr.bf16.mxu1 %v3602_v49 }
 0x23f   : > { %2349 = vmatpush1.bf16.msra.mxu1 %v3600_v52 }
 0x240   : > { %2350 = vmatprep.subr.bf16.mxu1 %v3605_v54 }
 0x242   : > { %3163 = vmatmul.mubr.msk.bf16.gmra.mrb[40].mxu1 %vm953_vm0, %v1377_v4 }
 0x243   : > { %2351 = vmatpush1.bf16.msra.mxu1 %v3603_v51  ;;  %2378 = vmatprep.mubr.bf16.mxu1 %v3633_v0 }
 0x244   : > { %2352 = vmatprep.subr.bf16.mxu1 %v3608_v56 }
 0x247   : > { %2353 = vmatpush1.bf16.msra.mxu1 %v3606_v59 }
 0x24a   : > { %3180 = vmatmul.mubr.msk.bf16.vlgmr.msra.gmra.mrb[36].mxu1 %vm953_vm0, %v1378_v8 }
 0x24b   : > { %2388 = vmatprep.mubr.bf16.mxu1 %v3633_v0 }
 0x252   : > { %3181 = vmatmul.mubr.msk.bf16.gmra.mrb[40].mxu1 %vm953_vm0, %v1379_v12 }
 0x253   : > { %2609 = vmatprep.mubr.f32.mxu1 %v3635_v28 }
 0x31d   : > { %v2380_v61 = vpop.f32.mrb[36].mxu1 }
 0x31e   : > { %v2382_v63 = vpop.f32.mrb[37].mxu1 }
 0x31f   : > { %v2384_v3 = vpop.f32.mrb[38].mxu1  ;;  %v2407_v4 = vadd.f32 %v2382_v63, %v2380_v61 }
 0x320   : > { %v2386_v53 = vpop.f32.mrb[39].mxu1 }
 0x321   : > { %2408 = vadd.xlane.f32.xlu0 %v2407_v4  ;;  %v2410_v55 = vadd.f32 %v2386_v53, %v2384_v3 }
 0x325   : > { %2411 = vadd.xlane.f32.xlu0 %v2410_v55  ;;  %v2390_v57 = vpop.f32.mrb[40].mxu1 }
 0x326   : > { %v2392_v58 = vpop.f32.mrb[41].mxu1 }
 0x327   : > { %v2394_v9 = vpop.f32.mrb[42].mxu1  ;;  %v2413_v13 = vadd.f32 %v2392_v58, %v2390_v57 }
 0x328   : > { %v2396_v8 = vpop.f32.mrb[43].mxu1 }
 0x329   : > { %2414 = vadd.xlane.f32.xlu1 %v2413_v13  ;;  %v2416_v60 = vadd.f32 %v2396_v8, %v2394_v9 }
 0x32d   : > { %2417 = vadd.xlane.f32.xlu1 %v2416_v60 }
 0x3ae   : > { %v2409_v62 = vpop.xlane.xlu0 %2408 }
 0x3af   : > { %v2420_v19 = vmul.f32 0.00390625, %v2409_v62 }
 0x3b1   : > { %v2424_v22 = vsub.f32 %v2380_v61, %v2420_v19  ;;  %v2425_v12 = vsub.f32 %v2382_v63, %v2420_v19 }
 0x3b2   : > { %v2412_v1 = vpop.xlane.xlu0 %2411 }
 0x3b3   : > { %v2421_v2 = vmul.f32 0.00390625, %v2412_v1  ;;  %v2432_v5 = vmul.f32 %v2424_v22, %v2424_v22  ;;  %v2433_v7 = vmul.f32 %v2425_v12, %v2425_v12 }
 0x3b5   : > { %v2426_v6 = vsub.f32 %v2384_v3, %v2421_v2  ;;  %v2427_v11 = vsub.f32 %v2386_v53, %v2421_v2  ;;  %v2440_v15 = vadd.f32 %v2433_v7, %v2432_v5 }
 0x3b6   : > { %v2415_v17 = vpop.xlane.xlu1 %2414 }
 0x3b7   : > { %v2422_v10 = vmul.f32 0.00390625, %v2415_v17  ;;  %2441 = vadd.xlane.f32.xlu0 %v2440_v15  ;;  %v2434_v20 = vmul.f32 %v2426_v6, %v2426_v6  ;;  %v2435_v23 = vmul.f32 %v2427_v11, %v2427_v11 }
 0x3b9   : > { %v4394_v25 = vsub.f32 %v2390_v57, %v2422_v10  ;;  %v4396_v27 = vsub.f32 %v2392_v58, %v2422_v10  ;;  %v2443_v29 = vadd.f32 %v2435_v23, %v2434_v20 }
 0x3ba   : > { %v2418_v43 = vpop.xlane.xlu1 %2417 }
 0x3bb   : > { %2444 = vadd.xlane.f32.xlu1 %v2443_v29  ;;  %v2436_v30 = vmul.f32 %v4394_v25, %v4394_v25  ;;  %v2437_v14 = vmul.f32 %v4396_v27, %v4396_v27  ;;  %v2423_v18 = vmul.f32 0.00390625, %v2418_v43 }
 0x3bd   : > { %v2446_v32 = vadd.f32 %v2437_v14, %v2436_v30  ;;  %v2430_v37 = vsub.f32 %v2394_v9, %v2423_v18  ;;  %v2431_v21 = vsub.f32 %v2396_v8, %v2423_v18 }
 0x3bf   : > { %2447 = vadd.xlane.f32.xlu0 %v2446_v32  ;;  %v2438_v24 = vmul.f32 %v2430_v37, %v2430_v37  ;;  %v2439_v26 = vmul.f32 %v2431_v21, %v2431_v21 }
 0x3c1   : > { %v2449_v44 = vadd.f32 %v2439_v26, %v2438_v24 }
 0x3cc   : > { %2483 = vperm.xlu1 %3360, %v2473_v34  }
 0x3d0   : > { %3361 = vset.pattern.permute.xlu1 %v3634_v39 }
 0x3d1   : > { %2505 = vperm.xlu1 %3361, %v2472_v36  }
 0x3d5   : > { %2509 = vperm.xlu1 %3361, %v2473_v34   ;;  %2478 = vperm.xlu0 %3359, %v2472_v36  }
 0x3d9   : > { %3362 = vset.pattern.permute.xlu1 %v3633_v0  ;;  %3364 = vset.pattern.permute.xlu0 %v3634_v39 }
 0x3da   : > { %2488 = vperm.xlu1 %3362, %v2474_v16  }
 0x3de   : > { %2493 = vperm.xlu1 %3362, %v2475_v41  }
 0x3e2   : > { %3363 = vset.pattern.permute.xlu1 %v3634_v39 }
 0x3e3   : > { %2513 = vperm.xlu1 %3363, %v2474_v16  }
 0x407   : > { %2450 = vadd.xlane.f32.xlu1 %v2449_v44 }
 0x418   : > { %2517 = vperm.xlu1 %3363, %v2475_v41  }
 0x444   : > { %v2442_v0 = vpop.xlane.xlu0 %2441 }
 0x445   : > { %v2452_v31 = vmul.f32 0.00390625, %v2442_v0 }
 0x447   : > { %v2456_v33 = vadd.f32 1e-05, %v2452_v31 }
 0x448   : > { %v2445_v46 = vpop.xlane.xlu1 %2444 }
 0x449   : > { %3609 = vrsqrt.f32 %v2456_v33  ;;  %v2453_v35 = vmul.f32 0.00390625, %v2445_v46 }
 0x44b   : > { %v2457_v38 = vadd.f32 1e-05, %v2453_v35 }
 0x44c   : > { %v2484_v40 = vpop.permute.xlu1 %2483  ;;  %v2448_v48 = vpop.xlane.xlu0 %2447 }
 0x44d   : > { %3611 = vrsqrt.f32 %v2457_v38 }
 0x450   : > { %v2506_v49 = vpop.permute.xlu1 %2505 }
 0x453   : > { %v3610_v42 = vpop.eup %3609 }
 0x454   : > { %v2464_v45 = vmul.f32 %v3610_v42, %v2424_v22  ;;  %v2465_v47 = vmul.f32 %v3610_v42, %v2425_v12  ;;  %v2479_v50 = vpop.permute.xlu0 %2478  ;;  %v2510_v53 = vpop.permute.xlu1 %2509  ;;  %v2454_v12 = vmul.f32 0.00390625, %v2448_v48 }
 0x456   : > { %v2496_v52 = vmul.f32 %v2479_v50, %v2464_v45  ;;  %v2497_v54 = vmul.f32 %v2479_v50, %v2465_v47  ;;  %v2458_v1 = vadd.f32 1e-05, %v2454_v12 }
 0x457   : > { %v3612_v51 = vpop.eup %3611 }
 0x458   : > { %v2466_v56 = vmul.f32 %v3612_v51, %v2426_v6  ;;  %v2467_v59 = vmul.f32 %v3612_v51, %v2427_v11  ;;  %v2520_v3 = vadd.f32 %v2506_v49, %v2496_v52  ;;  %v2521_v4 = vadd.f32 %v2506_v49, %v2497_v54 }
 0x459   : > { %v2489_v19 = vpop.permute.xlu1 %2488  ;;  %3613 = vrsqrt.f32 %v2458_v1  ;;  %v2630_v54 = vlaneseq }
 0x45a   : > { %v2498_v61 = vmul.f32 %v2484_v40, %v2466_v56  ;;  %v2499_v63 = vmul.f32 %v2484_v40, %v2467_v59  ;;  %v2528_v13 = vmax.f32 %v2520_v3, 0.0  ;;  %v2529_v8 = vmax.f32 %v2521_v4, 0.0  ;;  %v4450_v3 = vld [vmem:[%s4510_s5] sm:$0xff]  ;;  %v4455_v4 = vld [vmem:[%s4510_s5 + $0x8] sm:$0xff] }
 0x45b   : > { %v4444_v59 = vand.u32 127, %v2630_v54  ;;  %vm2814_vm11 = vcmp.lt.s32.totalorder %v2630_v54, 256 }
 0x45c   : > { %v2522_v55 = vadd.f32 %v2510_v53, %v2498_v61  ;;  %v2523_v57 = vadd.f32 %v2510_v53, %v2499_v63  ;;  %v2652_v53 = vrot.slane %v4450_v3, 1 }
 0x45d   : > { %v2494_v22 = vpop.permute.xlu1 %2493  ;;  %vm2647_vm2 = vcmp.lt.s32.totalorder %v4444_v59, 16  ;;  %vm2632_vm3 = vcmp.lt.s32.totalorder %v4444_v59, 17  ;;  %vm2668_vm4 = vcmp.lt.s32.totalorder %v4444_v59, 15  ;;  %vm2687_vm5 = vcmp.lt.s32.totalorder %v4444_v59, 1 }
 0x45e   : > { %v2530_v58 = vmax.f32 %v2522_v55, 0.0  ;;  %v2531_v9 = vmax.f32 %v2523_v57, 0.0  ;;  %v2653_v55 = vrot.slane %v4455_v4, 1  ;;  %vm2718_vm6 = vcmp.lt.s32.totalorder %v4444_v59, 127 }
 0x45f   : > { %vm2737_vm7 = vcmp.lt.s32.totalorder %v4444_v59, 113  ;;  %vm2756_vm8 = vcmp.lt.s32.totalorder %v4444_v59, 112  ;;  %vm2771_vm9 = vcmp.lt.s32.totalorder %v4444_v59, 111 }
 0x460   : > { %v3190_v60 = vpack.c.bf16 %v2530_v58, %v2528_v13  ;;  %v3188_v62 = vpack.c.bf16 %v2531_v9, %v2529_v8  ;;  %v2671_v13 = vrot.slane %v4450_v3, 2  ;;  %v2672_v8 = vrot.slane %v4455_v4, 2 }
 0x462   : > { %3189 = vmatprep.subr.bf16.mxu1 %v3188_v62  ;;  %v2514_v2 = vpop.permute.xlu1 %2513 }
 0x463   : > { %3191 = vmatpush1.bf16.msra.mxu1 %v3190_v60  ;;  %v3614_v11 = vpop.eup %3613 }
 0x464   : > { %v2468_v15 = vmul.f32 %v3614_v11, %v4394_v25  ;;  %v2469_v17 = vmul.f32 %v3614_v11, %v4396_v27  ;;  %v2536_v27 = vld [vmem:[%s4509_s4] sm:$0xff] }
 0x466   : > { %v2500_v20 = vmul.f32 %v2489_v19, %v2468_v15  ;;  %v2501_v23 = vmul.f32 %v2489_v19, %v2469_v17 }
 0x468   : > { %v2524_v14 = vadd.f32 %v2514_v2, %v2500_v20  ;;  %v2525_v32 = vadd.f32 %v2514_v2, %v2501_v23 }
 0x46a   : > { %v2532_v43 = vmax.f32 %v2524_v14, 0.0  ;;  %v2533_v18 = vmax.f32 %v2525_v32, 0.0 }
 0x494   : > { %v2451_v5 = vpop.xlane.xlu1 %2450 }
 0x495   : > { %v2455_v7 = vmul.f32 0.00390625, %v2451_v5  ;;  %v2690_v5 = vrot.slane %v4450_v3, 3 }
 0x497   : > { %v2459_v6 = vadd.f32 1e-05, %v2455_v7  ;;  %v2691_v7 = vrot.slane %v4455_v4, 3 }
 0x498   : > { %v2518_v39 = vpop.permute.xlu1 %2517 }
 0x499   : > { %3615 = vrsqrt.f32 %v2459_v6 }
 0x4a3   : > { %v3616_v10 = vpop.eup %3615 }
 0x4a4   : > { %v2470_v29 = vmul.f32 %v3616_v10, %v2430_v37  ;;  %v2471_v30 = vmul.f32 %v3616_v10, %v2431_v21  ;;  %v2537_v37 = vld [vmem:[%s4509_s4 + $0x8] sm:$0x1] }
 0x4a6   : > { %v2502_v34 = vmul.f32 %v2494_v22, %v2470_v29  ;;  %v2503_v36 = vmul.f32 %v2494_v22, %v2471_v30 }
 0x4a8   : > { %v2526_v16 = vadd.f32 %v2518_v39, %v2502_v34  ;;  %v2527_v41 = vadd.f32 %v2518_v39, %v2503_v36 }
 0x4aa   : > { %v2534_v24 = vmax.f32 %v2526_v16, 0.0  ;;  %v2535_v26 = vmax.f32 %v2527_v41, 0.0  ;;  %v2702_v16 = vrot.slane %v4450_v3, 4  ;;  %v2703_v41 = vrot.slane %v4455_v4, 4 }
 0x4ac   : > { %v3194_v44 = vpack.c.bf16 %v2534_v24, %v2532_v43  ;;  %v3192_v25 = vpack.c.bf16 %v2535_v26, %v2533_v18 }
 0x4ae   : > { %3193 = vmatprep.subr.bf16.mxu1 %v3192_v25 }
 0x4af   : > { %3195 = vmatpush1.bf16.msra.mxu1 %v3194_v44  ;;  %v2721_v44 = vrot.slane %v4450_v3, 5 }
 0x4b2   : > { %3182 = vmatmul.mubr.msk.f32.vlgmr.msra.gmra.mrb[44].mxu1 %vm2538_vm1, %v2536_v27 }
 0x4b3   : > { %2615 = vmatprep.mubr.f32.mxu1 %v3635_v28 }
 0x4b6   : > { %3183 = vmatmul.mubr.msk.f32.gmra.mrb[46].mxu1 %vm2538_vm1, %v2537_v37  ;;  %v2722_v37 = vrot.slane %v4455_v4, 5 }
 0x585   : > { %v4425_v21 = vpop.f32.mrb[44].mxu1 }
 0x586   : > { %2626 = vrot.lane.b32.xlu1 %v4425_v21, %s3636_s18  ;;  %v4428_v0 = vpop.f32.mrb[45].mxu1  ;;  %v2639_v31 = vrot.slane %v4425_v21, 1  ;;  %v2660_v35 = vrot.slane %v4425_v21, 2  ;;  %v2679_v40 = vrot.slane %v4425_v21, 3  ;;  %v2710_v42 = vrot.slane %v4425_v21, 5 }
 0x587   : > { %2628 = vrot.lane.b32.xlu0 %v4428_v0, %s3636_s18  ;;  %v2640_v33 = vrot.slane %v4428_v0, 1  ;;  %v2661_v38 = vrot.slane %v4428_v0, 2  ;;  %v2680_v48 = vrot.slane %v4428_v0, 3  ;;  %v2711_v45 = vrot.slane %v4428_v0, 5 }
 0x588   : > { %v2729_v47 = vrot.slane %v4425_v21, 6  ;;  %v2730_v50 = vrot.slane %v4428_v0, 6  ;;  %v2748_v49 = vrot.slane %v4425_v21, 7  ;;  %v2749_v52 = vrot.slane %v4428_v0, 7 }
 0x589   : > { %v2617_v46 = vpop.f32.mrb[46].mxu1  ;;  %v2698_v39 = vrot.slane %v4425_v21, 4  ;;  %v2699_v24 = vrot.slane %v4428_v0, 4  ;;  %v2741_v0 = vrot.slane %v4455_v4, 6 }
 0x58a   : > { %2643 = vrot.lane.b32.xlu1 %v2639_v31, %s3637_s19  ;;  %v2619_v28 = vpop.f32.mrb[47].mxu1 }
 0x58b   : > { %2645 = vrot.lane.b32.xlu0 %v2640_v33, %s3637_s19  ;;  %v2706_v21 = vmul.f32 %v2702_v16, %v2698_v39  ;;  %v2801_v39 = vshrl.u32 %v2630_v54, 7 }
 0x58e   : > { %2664 = vrot.lane.b32.xlu1 %v2660_v35, %s3638_s20  ;;  %v2740_v35 = vrot.slane %v4450_v3, 6 }
 0x58f   : > { %2666 = vrot.lane.b32.xlu0 %v2661_v38, %s3638_s20  ;;  %s313_s20 = scalar_lea.vmem %s4513_s8, %s4515_s30 }
 0x592   : > { %2683 = vrot.lane.b32.xlu1 %v2679_v40, %s3639_s21 }
 0x593   : > { %2685 = vrot.lane.b32.xlu0 %v2680_v48, %s3639_s21 }
 0x596   : > { %2714 = vrot.lane.b32.xlu1 %v2710_v42, %s3640_s22  ;;  %v2759_v42 = vrot.slane %v4450_v3, 7 }
 0x597   : > { %2716 = vrot.lane.b32.xlu0 %v2711_v45, %s3640_s22  ;;  %v2760_v45 = vrot.slane %v4455_v4, 7 }
 0x59a   : > { %2733 = vrot.lane.b32.xlu1 %v2729_v47, %s3641_s23 }
 0x59b   : > { %2735 = vrot.lane.b32.xlu0 %v2730_v50, %s3641_s23 }
 0x59e   : > { %2752 = vrot.lane.b32.xlu1 %v2748_v49, %s3642_s24 }
 0x59f   : > { %2754 = vrot.lane.b32.xlu0 %v2749_v52, %s3642_s24 }
 0x5a2   : > { %2767 = vrot.lane.b32.xlu1 %v2617_v46, %s3643_s25 }
 0x5a3   : > { %2769 = vrot.lane.b32.xlu0 %v2619_v28, %s3643_s25  ;;  %v2707_v28 = vmul.f32 %v2703_v41, %v2699_v24 }
 0x5f8   : > { %v2627_v51 = vpop.permute.xlu1 %2626 }
 0x5f9   : > { %v2629_v56 = vpop.permute.xlu0 %2628 }
 0x5fa   : > { %v2633_v62 = vsel %vm2632_vm3, %v2627_v51, %v2629_v56  ;;  %v2634_v19 = vsel %vm2632_vm3, %v2629_v56, %v2627_v51 }
 0x5fb   : > { %v2635_v11 = vmul.f32 %v2634_v19, %v4450_v3  ;;  %v2636_v15 = vmul.f32 %v2633_v62, %v4455_v4  ;;  %v2624_v4 = vld [vmem:[%s4510_s5 + $0x10] sm:$0x1] }
 0x5fc   : > { %v2644_v61 = vpop.permute.xlu1 %2643 }
 0x5fd   : > { %v2646_v63 = vpop.permute.xlu0 %2645 }
 0x5fe   : > { %v2648_v57 = vsel %vm2647_vm2, %v2644_v61, %v2646_v63  ;;  %v2649_v58 = vsel %vm2647_vm2, %v2646_v63, %v2644_v61 }
 0x5ff   : > { %v2656_v1 = vmul.f32 %v2652_v53, %v2649_v58  ;;  %v2657_v2 = vmul.f32 %v2653_v55, %v2648_v57 }
 0x600   : > { %v2665_v9 = vpop.permute.xlu1 %2664 }
 0x601   : > { %v2667_v60 = vpop.permute.xlu0 %2666  ;;  %v2658_v30 = vadd.f32 %v2656_v1, %v2635_v11  ;;  %v2659_v14 = vadd.f32 %v2657_v2, %v2636_v15 }
 0x602   : > { %v2669_v22 = vsel %vm2668_vm4, %v2665_v9, %v2667_v60  ;;  %v2670_v12 = vsel %vm2668_vm4, %v2667_v60, %v2665_v9 }
 0x603   : > { %v2675_v17 = vmul.f32 %v2671_v13, %v2670_v12  ;;  %v2676_v10 = vmul.f32 %v2672_v8, %v2669_v22  ;;  %v2625_v8 = vld [vmem:[%s4510_s5 + $0x18] sm:$0x1] }
 0x604   : > { %v2684_v6 = vpop.permute.xlu1 %2683 }
 0x605   : > { %v2686_v20 = vpop.permute.xlu0 %2685  ;;  %v2677_v43 = vadd.f32 %v2675_v17, %v2658_v30  ;;  %v2678_v18 = vadd.f32 %v2676_v10, %v2659_v14 }
 0x606   : > { %v2688_v23 = vsel %vm2687_vm5, %v2684_v6, %v2686_v20  ;;  %v2689_v29 = vsel %vm2687_vm5, %v2686_v20, %v2684_v6 }
 0x607   : > { %v2694_v32 = vmul.f32 %v2690_v5, %v2689_v29  ;;  %v2695_v34 = vmul.f32 %v2691_v7, %v2688_v23  ;;  %v2779_v7 = vstv %s2778_s9 }
 0x608   : > { %v2715_v36 = vpop.permute.xlu1 %2714 }
 0x609   : > { %v2717_v26 = vpop.permute.xlu0 %2716  ;;  %v2696_v25 = vadd.f32 %v2694_v32, %v2677_v43  ;;  %v2697_v27 = vadd.f32 %v2695_v34, %v2678_v18  ;;  %v3644_v32 = vmov 1966171168  }
 0x60a   : > { %v2719_v31 = vsel %vm2718_vm6, %v2715_v36, %v2717_v26  ;;  %v2720_v33 = vsel %vm2718_vm6, %v2717_v26, %v2715_v36  ;;  %v2798_v34 = vunpack.c.l.s4 %v3644_v32 }
 0x60b   : > { %v2708_v47 = vadd.f32 %v2706_v21, %v2696_v25  ;;  %v2709_v50 = vadd.f32 %v2707_v28, %v2697_v27  ;;  %v2725_v49 = vmul.f32 %v2721_v44, %v2719_v31  ;;  %v2726_v52 = vmul.f32 %v2722_v37, %v2720_v33 }
 0x60c   : > { %v2734_v46 = vpop.permute.xlu1 %2733  ;;  %v2799_v36 = vunpack.c.0.s8 %v2798_v34 }
 0x60d   : > { %v2736_v38 = vpop.permute.xlu0 %2735  ;;  %v2727_v57 = vadd.f32 %v2725_v49, %v2708_v47  ;;  %v2728_v58 = vadd.f32 %v2726_v52, %v2709_v50 }
 0x60e   : > { %v2738_v40 = vsel %vm2737_vm7, %v2734_v46, %v2736_v38  ;;  %v2739_v48 = vsel %vm2737_vm7, %v2736_v38, %v2734_v46  ;;  %v2802_v41 = vsub.s32 %v2799_v36, %v2801_v39 }
 0x60f   : > { %v2744_v56 = vmul.f32 %v2740_v35, %v2738_v40  ;;  %v2745_v61 = vmul.f32 %v2741_v0, %v2739_v48 }
 0x610   : > { %v2753_v51 = vpop.permute.xlu1 %2752 }
 0x611   : > { %v2755_v63 = vpop.permute.xlu0 %2754  ;;  %v2746_v60 = vadd.f32 %v2744_v56, %v2727_v57  ;;  %v2747_v62 = vadd.f32 %v2745_v61, %v2728_v58 }
 0x612   : > { %v2757_v53 = vsel %vm2756_vm8, %v2753_v51, %v2755_v63  ;;  %v2758_v55 = vsel %vm2756_vm8, %v2755_v63, %v2753_v51 }
 0x613   : > { %v2763_v9 = vmul.f32 %v2759_v42, %v2757_v53  ;;  %v2764_v13 = vmul.f32 %v2760_v45, %v2758_v55 }
 0x614   : > { %v2768_v3 = vpop.permute.xlu1 %2767 }
 0x615   : > { %v2770_v19 = vpop.permute.xlu0 %2769  ;;  %v2765_v1 = vadd.f32 %v2763_v9, %v2746_v60  ;;  %v2766_v59 = vadd.f32 %v2764_v13, %v2747_v62 }
 0x616   : > { %v2772_v22 = vsel %vm2771_vm9, %v2768_v3, %v2770_v19  ;;  %v2773_v12 = vsel %vm2771_vm9, %v2770_v19, %v2768_v3 }
 0x617   : > { %v2774_v2 = vmul.f32 %v2772_v22, %v2624_v4  ;;  %v2775_v5 = vmul.f32 %v2773_v12, %v2625_v8 }
 0x619   : > { %v2776_v6 = vadd.f32 %v2774_v2, %v2765_v1  ;;  %v2777_v11 = vadd.f32 %v2775_v5, %v2766_v59 }
 0x61b   : > { %v2780_v15 = vadd.f32 %v2779_v7, %v2776_v6  ;;  %v2781_v17 = vadd.f32 %v2779_v7, %v2777_v11 }
 0x61d   : > { %v3184_v10 = vmul.f32 -1.442695, %v2780_v15  ;;  %v3185_v20 = vmul.f32 -1.442695, %v2781_v17 }
 0x61f   : > { %3617 = vpow2.f32 %v3184_v10 }
 0x620   : > { %3619 = vpow2.f32 %v3185_v20 }
 0x629   : > { %v3618_v23 = vpop.eup %3617 }
 0x62a   : > { %v3620_v29 = vpop.eup %3619  ;;  %v2788_v30 = vadd.f32 1.0, %v3618_v23 }
 0x62b   : > { %v2789_v14 = vadd.f32 1.0, %v3620_v29 }
 0x62c   : > { %3621 = vrcp.f32 %v2788_v30 }
 0x62d   : > { %3623 = vrcp.f32 %v2789_v14 }
 0x636   : > { %v3622_v16 = vpop.eup %3621 }
 0x637   : > { %v3624_v43 = vpop.eup %3623  ;;  %v2818_v18 = vsel %vm2817_vm10, %v3622_v16, -inf }
 0x638   : > { %v2796_v24 = vcombine.low %v3622_v16, %v3624_v43  ;;  %v2819_v26 = vsel %vm2817_vm10, %v3624_v43, -inf }
 0x639   : > { %v2820_v44 = vmax.f32 %v2818_v18, %v2819_v26 }
 0x63a   : > { %v2803_v25 = vrot.slane %v2796_v24, %v2802_v41 }
 0x63b   : > { %2821 = vmax.xlane.f32.xlu1 %v2820_v44 }
 0x63c   : > { %v2810_v27 = vrot.slane %v2803_v25, %v2802_v41 }
 0x63e   : > { %2816 = vst.msk [vmem:[%s310_s17] sm:$0x3] %vm2814_vm11, %v2810_v27 }
 0x6c8   : > { %v2822_v37 = vpop.xlane.xlu1 %2821 }
 0x6c9   : > { %2824 = vst.msk [vmem:[%s313_s20] sm:$0x1] %vm2823_vm12, %v2822_v37 }
 0x6ca PF: > { %s20_s29 = sadd.s32 1, %s3631_s29  }
 0x6cb   : > { %p17_p4 = scmp.ge.s32.totalorder %s20_s29, 4  }
 0x6cd   :  { %19 = sbr.rel (!%p17_p4) target bundleno = 2 (0x2), region = 98 }

</bundles_post_ra>
